<compile_context>
chip_gen: v5e
topology: v5e:2x2
jax: 0.10.0
libtpu: 0.0.40
codegen_flags: <defaults>
</compile_context>

<pallas_src>
import functools

import jax
import jax.numpy as jnp
from jax.experimental import pallas as pl
from jax.experimental.pallas import tpu as pltpu


def _round_up(x: int, m: int) -> int:
    return ((x + m - 1) // m) * m


def _interaction_kernel(
    x_ref,       # (Np, Hp)  f32   node features (resident)
    src_ref,     # (1, 1, TE) i32  edge_index[0] (source / neighbor j), lane-dense
    dst_ref,     # (1, 1, TE) i32  edge_index[1] (target node i), lane-dense
    ew_ref,      # (1, 1, TE) f32  edge weights (distances), lane-dense
    ea_ref,      # (TE, Rp)  f32   rbf-expanded distances
    wfn1_ref,    # (Rp, Fp)
    bfn1_ref,    # (1, Fp)
    wfn2_ref,    # (Fp, Fp)
    bfn2_ref,    # (1, Fp)
    wlin1_ref,   # (Hp, Fp)  cfconv lin1 (no bias)
    wlin2_ref,   # (Fp, Hp)
    blin2_ref,   # (1, Hp)
    wlin_ref,    # (Hp, Hp)  interaction-block lin
    blin_ref,    # (1, Hp)
    out_ref,     # (Np, Hp)
    x1_scr,      # (Np, Fp)  bf16 scratch: x @ wlin1
    acc_scr,     # (Np, Fp)  f32  scratch: scatter-add accumulator
    *,
    cutoff: float,
):
    k = pl.program_id(0)

    # --- init (first edge tile): compute x1 once, zero the accumulator -------
    @pl.when(k == 0)
    def _init():
        x1 = jnp.dot(x_ref[...], wlin1_ref[...], preferred_element_type=jnp.float32)
        x1_scr[...] = x1.astype(jnp.bfloat16)
        acc_scr[...] = jnp.zeros_like(acc_scr)

    # --- filter network on this edge tile: Linear -> tanh -> Linear ----------
    ea = ea_ref[...]                                                   # (TE, Rp)
    h = jnp.tanh(
        jnp.dot(ea, wfn1_ref[...], preferred_element_type=jnp.float32) + bfn1_ref[...]
    )
    w_filt = (
        jnp.dot(h, wfn2_ref[...], preferred_element_type=jnp.float32) + bfn2_ref[...]
    )                                                                  # (TE, Fp)

    # --- cosine cutoff, lane-dense (1, TE) ------------------------------------
    ew = ew_ref[0]                                                     # (1, TE)
    c = 0.5 * (jnp.cos(ew * (jnp.pi / cutoff)) + 1.0)
    c = jnp.where(ew < cutoff, c, 0.0)                                 # (1, TE)
    # padded edges carry ew = 2*cutoff -> c == 0 -> they contribute nothing.

    # --- gather x1[src] and scatter-add into acc via bf16 one-hot matmuls -----
    n_nodes = x1_scr.shape[0]
    te = ea.shape[0]
    node_iota = jax.lax.broadcasted_iota(jnp.int32, (n_nodes, te), 0)  # (Np, TE)

    src = src_ref[0]                                                   # (1, TE) i32
    # cutoff scale folded into the gather one-hot: column e is c_e at row src_e.
    gath = jnp.where(node_iota == src, c, 0.0).astype(jnp.bfloat16)    # (Np, TE)
    x_j = jax.lax.dot_general(
        gath, x1_scr[...],
        dimension_numbers=(((0,), (0,)), ((), ())),
        preferred_element_type=jnp.float32,
    )                                                                  # (TE, Fp)

    msg = (x_j * w_filt).astype(jnp.bfloat16)                          # (TE, Fp)

    dst = dst_ref[0]                                                   # (1, TE) i32
    scat = (node_iota == dst).astype(jnp.bfloat16)                     # (Np, TE)
    acc_scr[...] += jnp.dot(scat, msg, preferred_element_type=jnp.float32)

    # --- finalize (last edge tile): lin2 -> tanh -> lin -----------------------
    @pl.when(k == pl.num_programs(0) - 1)
    def _finalize():
        y = (
            jnp.dot(acc_scr[...], wlin2_ref[...], preferred_element_type=jnp.float32)
            + blin2_ref[...]
        )
        y = jnp.tanh(y)
        out_ref[...] = (
            jnp.dot(y, wlin_ref[...], preferred_element_type=jnp.float32)
            + blin_ref[...]
        )


def interaction_block(x, src, dst, edge_weight, edge_attr, params, cutoff, *, edge_tile=128):
    """x: (N, H) f32, src/dst: (E,) i32, edge_weight: (E,) f32, edge_attr: (E, R) f32."""
    n, h = x.shape
    e = src.shape[0]
    r = edge_attr.shape[1]
    f = params["wlin1"].shape[1]

    hp = _round_up(h, 128)
    fp = _round_up(f, 128)
    rp = _round_up(r, 128)
    np_ = _round_up(n, 8)
    ep = _round_up(e, edge_tile)
    n_tiles = ep // edge_tile

    # ---- pad node features / edge data (padded edges are masked by the cutoff) --
    xp = jnp.pad(x.astype(jnp.float32), ((0, np_ - n), (0, hp - h)))
    srcp = jnp.pad(src.astype(jnp.int32), (0, ep - e)).reshape(n_tiles, 1, edge_tile)
    dstp = jnp.pad(dst.astype(jnp.int32), (0, ep - e)).reshape(n_tiles, 1, edge_tile)
    ewp = jnp.pad(
        edge_weight.astype(jnp.float32), (0, ep - e), constant_values=2.0 * float(cutoff)
    ).reshape(n_tiles, 1, edge_tile)
    eap = jnp.pad(edge_attr.astype(jnp.float32), ((0, ep - e), (0, rp - r)))

    # ---- pad parameters with zeros (padded channels stay exactly zero) ----------
    wfn1 = jnp.pad(params["wfn1"], ((0, rp - r), (0, fp - f)))
    bfn1 = jnp.pad(params["bfn1"], ((0, 0), (0, fp - f)))
    wfn2 = jnp.pad(params["wfn2"], ((0, fp - f), (0, fp - f)))
    bfn2 = jnp.pad(params["bfn2"], ((0, 0), (0, fp - f)))
    wlin1 = jnp.pad(params["wlin1"], ((0, hp - h), (0, fp - f)))
    wlin2 = jnp.pad(params["wlin2"], ((0, fp - f), (0, hp - h)))
    blin2 = jnp.pad(params["blin2"], ((0, 0), (0, hp - h)))
    wlin = jnp.pad(params["wlin"], ((0, hp - h), (0, hp - h)))
    blin = jnp.pad(params["blin"], ((0, 0), (0, hp - h)))

    args = (xp, srcp, dstp, ewp, eap,
            wfn1, bfn1, wfn2, bfn2, wlin1, wlin2, blin2, wlin, blin)

    in_specs = [
        pl.BlockSpec((np_, hp), lambda k: (0, 0)),                 # x (resident)
        pl.BlockSpec((1, 1, edge_tile), lambda k: (k, 0, 0)),      # src
        pl.BlockSpec((1, 1, edge_tile), lambda k: (k, 0, 0)),      # dst
        pl.BlockSpec((1, 1, edge_tile), lambda k: (k, 0, 0)),      # edge_weight
        pl.BlockSpec((edge_tile, rp), lambda k: (k, 0)),           # edge_attr
        pl.BlockSpec((rp, fp), lambda k: (0, 0)),                  # wfn1
        pl.BlockSpec((1, fp), lambda k: (0, 0)),                   # bfn1
        pl.BlockSpec((fp, fp), lambda k: (0, 0)),                  # wfn2
        pl.BlockSpec((1, fp), lambda k: (0, 0)),                   # bfn2
        pl.BlockSpec((hp, fp), lambda k: (0, 0)),                  # wlin1
        pl.BlockSpec((fp, hp), lambda k: (0, 0)),                  # wlin2
        pl.BlockSpec((1, hp), lambda k: (0, 0)),                   # blin2
        pl.BlockSpec((hp, hp), lambda k: (0, 0)),                  # wlin
        pl.BlockSpec((1, hp), lambda k: (0, 0)),                   # blin
    ]

    # advisory cost estimate so XLA schedules stacked blocks sensibly
    flops = int(
        2 * ep * (rp * fp + fp * fp)          # filter network
        + 2 * np_ * hp * fp                   # lin1
        + 4 * ep * np_ * fp                   # one-hot gather + scatter matmuls
        + 2 * np_ * (fp * hp + hp * hp)       # lin2 + lin
    )
    transcendentals = int(ep * fp + np_ * hp + ep)   # tanh(filter), tanh(y), cos
    bytes_accessed = int(
        4 * (xp.size + eap.size + ewp.size + srcp.size + dstp.size)
        + 4 * (wfn1.size + bfn1.size + wfn2.size + bfn2.size + wlin1.size
               + wlin2.size + blin2.size + wlin.size + blin.size)
        + 4 * np_ * hp
    )

    out = pl.pallas_call(
        functools.partial(_interaction_kernel, cutoff=float(cutoff)),
        out_shape=jax.ShapeDtypeStruct((np_, hp), jnp.float32),
        grid_spec=pltpu.PrefetchScalarGridSpec(
            num_scalar_prefetch=0,
            grid=(n_tiles,),
            in_specs=in_specs,
            out_specs=pl.BlockSpec((np_, hp), lambda k: (0, 0)),
            scratch_shapes=[
                pltpu.VMEM((np_, fp), jnp.bfloat16),   # x1 (bf16, gather operand)
                pltpu.VMEM((np_, fp), jnp.float32),    # scatter-add accumulator
            ],
        ),
        compiler_params=pltpu.CompilerParams(
            dimension_semantics=("arbitrary",),        # edge axis is a reduction
            vmem_limit_bytes=64 * 1024 * 1024,
        ),
        cost_estimate=pl.CostEstimate(
            flops=flops,
            transcendentals=transcendentals,
            bytes_accessed=bytes_accessed,
        ),
    )(*args)

    return out[:n, :h]


def _xavier_uniform(key, shape):
    fan_in, fan_out = shape[0], shape[1]
    limit = (6.0 / (fan_in + fan_out)) ** 0.5
    return jax.random.uniform(key, shape, jnp.float32, -limit, limit)


def make_params(key, hidden, num_rbf, num_filters):
    ks = jax.random.split(key, 7)
    return {
        # weights stored (in_features, out_features) so x @ W matches torch Linear
        "wfn1": _xavier_uniform(ks[0], (num_rbf, num_filters)),
        "bfn1": jnp.zeros((1, num_filters), jnp.float32),
        "wfn2": _xavier_uniform(ks[1], (num_filters, num_filters)),
        "bfn2": jnp.zeros((1, num_filters), jnp.float32),
        "wlin1": _xavier_uniform(ks[2], (hidden, num_filters)),        # no bias
        "wlin2": _xavier_uniform(ks[3], (num_filters, hidden)),
        "blin2": jnp.zeros((1, hidden), jnp.float32),
        "wlin": _xavier_uniform(ks[4], (hidden, hidden)),
        "blin": jnp.zeros((1, hidden), jnp.float32),
    }


def reference(x, src, dst, edge_weight, edge_attr, params, cutoff):
    """Pure-JAX f32 reference mirroring the PyTorch forward."""
    c = 0.5 * (jnp.cos(edge_weight * jnp.pi / cutoff) + 1.0)
    c = c * (edge_weight < cutoff).astype(jnp.float32)
    h = jnp.tanh(edge_attr @ params["wfn1"] + params["bfn1"])
    w_filt = (h @ params["wfn2"] + params["bfn2"]) * c[:, None]
    x1 = x @ params["wlin1"]
    msg = x1[src] * w_filt
    agg = jax.ops.segment_sum(msg, dst, num_segments=x.shape[0])
    y = agg @ params["wlin2"] + params["blin2"]
    y = jnp.tanh(y)
    return y @ params["wlin"] + params["blin"]


if __name__ == "__main__":
    key = jax.random.PRNGKey(0)
    k_x, k_ei, k_ew, k_p = jax.random.split(key, 4)

    num_examples, num_atoms, hidden = 2, 8, 32
    num_rbf, num_filters = 16, 32
    num_edges = 300                      # > 1 edge tile -> exercises accumulation
    cutoff = 5.0

    # x: (num_examples, num_atoms, hidden) -> flattened (N, hidden)
    x3 = jax.random.normal(k_x, (num_examples, num_atoms, hidden), jnp.float32)
    x = x3.reshape(num_examples * num_atoms, hidden)
    n_nodes = x.shape[0]

    edge_index = jax.random.randint(k_ei, (2, num_edges), 0, n_nodes, jnp.int32)
    src, dst = edge_index[0], edge_index[1]
    edge_weight = jax.random.uniform(k_ew, (num_edges,), jnp.float32, 0.5, 6.0)
    # synthetic rbf expansion of distances (gaussian rbf)
    centers = jnp.linspace(0.0, cutoff, num_rbf)
    edge_attr = jnp.exp(-10.0 * (edge_weight[:, None] - centers[None, :]) ** 2)

    params = make_params(k_p, hidden, num_rbf, num_filters)

    out = interaction_block(x, src, dst, edge_weight, edge_attr, params, cutoff)
    out = jax.block_until_ready(out)

    ref = reference(x, src, dst, edge_weight, edge_attr, params, cutoff)
    assert out.shape == (n_nodes, hidden)
    # gather/scatter operands run through the bf16 MXU path (f32 accumulation),
    # so tolerance is bf16-level rather than f32-level.
    max_err = float(jnp.max(jnp.abs(out - ref)))
    assert jnp.allclose(out, ref, atol=5e-2, rtol=5e-2), f"mismatch vs reference (max abs err {max_err})"

    print("KERNEL_OK")
</pallas_src>

<mosaic_0001>
module attributes {stable_mosaic.version = 11 : i64} {
  func.func @_interaction_kernel(%arg0: i32, %arg1: memref<16x128xf32, #tpu.memory_space<vmem>>, %arg2: memref<1x1x128xi32, #tpu.memory_space<vmem>>, %arg3: memref<1x1x128xi32, #tpu.memory_space<vmem>>, %arg4: memref<1x1x128xf32, #tpu.memory_space<vmem>>, %arg5: memref<128x128xf32, #tpu.memory_space<vmem>>, %arg6: memref<128x128xf32, #tpu.memory_space<vmem>>, %arg7: memref<1x128xf32, #tpu.memory_space<vmem>>, %arg8: memref<128x128xf32, #tpu.memory_space<vmem>>, %arg9: memref<1x128xf32, #tpu.memory_space<vmem>>, %arg10: memref<128x128xf32, #tpu.memory_space<vmem>>, %arg11: memref<128x128xf32, #tpu.memory_space<vmem>>, %arg12: memref<1x128xf32, #tpu.memory_space<vmem>>, %arg13: memref<128x128xf32, #tpu.memory_space<vmem>>, %arg14: memref<1x128xf32, #tpu.memory_space<vmem>>, %arg15: memref<16x128xf32, #tpu.memory_space<vmem>>, %arg16: memref<16x128xbf16, #tpu.memory_space<vmem>>, %arg17: memref<16x128xf32, #tpu.memory_space<vmem>>) attributes {dimension_semantics = [#tpu.dimension_semantics<arbitrary>], iteration_bounds = array<i64: 3>, scalar_prefetch = 0 : i64, scratch_operands = 2 : i64, tpu.core_type = #tpu.core_type<tc>, window_params = [{pipeline_mode = #tpu.pipeline_mode<synchronous>, transform_indices = @transform_0, window_bounds = array<i64: 16, 128>}, {transform_indices = @transform_1, window_bounds = array<i64: 1, 1, 128>}, {transform_indices = @transform_2, window_bounds = array<i64: 1, 1, 128>}, {transform_indices = @transform_3, window_bounds = array<i64: 1, 1, 128>}, {transform_indices = @transform_4, window_bounds = array<i64: 128, 128>}, {pipeline_mode = #tpu.pipeline_mode<synchronous>, transform_indices = @transform_5, window_bounds = array<i64: 128, 128>}, {pipeline_mode = #tpu.pipeline_mode<synchronous>, transform_indices = @transform_6, window_bounds = array<i64: 1, 128>}, {pipeline_mode = #tpu.pipeline_mode<synchronous>, transform_indices = @transform_7, window_bounds = array<i64: 128, 128>}, {pipeline_mode = #tpu.pipeline_mode<synchronous>, transform_indices = @transform_8, window_bounds = array<i64: 1, 128>}, {pipeline_mode = #tpu.pipeline_mode<synchronous>, transform_indices = @transform_9, window_bounds = array<i64: 128, 128>}, {pipeline_mode = #tpu.pipeline_mode<synchronous>, transform_indices = @transform_10, window_bounds = array<i64: 128, 128>}, {pipeline_mode = #tpu.pipeline_mode<synchronous>, transform_indices = @transform_11, window_bounds = array<i64: 1, 128>}, {pipeline_mode = #tpu.pipeline_mode<synchronous>, transform_indices = @transform_12, window_bounds = array<i64: 128, 128>}, {pipeline_mode = #tpu.pipeline_mode<synchronous>, transform_indices = @transform_13, window_bounds = array<i64: 1, 128>}, {pipeline_mode = #tpu.pipeline_mode<synchronous>, transform_indices = @transform_14, window_bounds = array<i64: 16, 128>}]} {
    %c0_i32 = arith.constant 0 : i32
    %0 = arith.cmpi eq, %arg0, %c0_i32 : i32
    %1 = arith.extui %0 : i1 to i32
    %c0_i32_0 = arith.constant 0 : i32
    %2 = arith.cmpi ne, %1, %c0_i32_0 : i32
    scf.if %2 {
      %c0_35 = arith.constant 0 : index
      %c0_36 = arith.constant 0 : index
      %56 = vector.load %arg1[%c0_35, %c0_36] : memref<16x128xf32, #tpu.memory_space<vmem>>, vector<16x128xf32>
      %c0_37 = arith.constant 0 : index
      %c0_38 = arith.constant 0 : index
      %57 = vector.load %arg10[%c0_37, %c0_38] : memref<128x128xf32, #tpu.memory_space<vmem>>, vector<128x128xf32>
      %cst_39 = arith.constant dense<0.000000e+00> : vector<16x128xf32>
      %58 = tpu.matmul %56, %57, %cst_39 {dimension_numbers = #tpu.dot_dimension_numbers<[1], [0], [0], [1], [0, 0, 1, 1], [], []>} : vector<16x128xf32>, vector<128x128xf32>, vector<16x128xf32> -> vector<16x128xf32>
      %59 = arith.truncf %58 : vector<16x128xf32> to vector<16x128xbf16>
      %c0_40 = arith.constant 0 : index
      %c0_41 = arith.constant 0 : index
      %60 = vector.load %arg16[%c0_40, %c0_41] : memref<16x128xbf16, #tpu.memory_space<vmem>>, vector<16x128xbf16>
      tpu.vector_store %arg16[%c0_40, %c0_41], %59 {strides = array<i32>} : memref<16x128xbf16, #tpu.memory_space<vmem>>, vector<16x128xbf16>,
      %cst_42 = arith.constant 0.000000e+00 : f32
      %61 = vector.broadcast %cst_42 : f32 to vector<16x128xf32>
      %c0_43 = arith.constant 0 : index
      %c0_44 = arith.constant 0 : index
      %62 = vector.load %arg17[%c0_43, %c0_44] : memref<16x128xf32, #tpu.memory_space<vmem>>, vector<16x128xf32>
      tpu.vector_store %arg17[%c0_43, %c0_44], %61 {strides = array<i32>} : memref<16x128xf32, #tpu.memory_space<vmem>>, vector<16x128xf32>,
    } else {
    }
    %c0 = arith.constant 0 : index
    %c0_1 = arith.constant 0 : index
    %3 = vector.load %arg5[%c0, %c0_1] : memref<128x128xf32, #tpu.memory_space<vmem>>, vector<128x128xf32>
    %c0_2 = arith.constant 0 : index
    %c0_3 = arith.constant 0 : index
    %4 = vector.load %arg6[%c0_2, %c0_3] : memref<128x128xf32, #tpu.memory_space<vmem>>, vector<128x128xf32>
    %cst = arith.constant dense<0.000000e+00> : vector<128x128xf32>
    %5 = tpu.matmul %3, %4, %cst {dimension_numbers = #tpu.dot_dimension_numbers<[1], [0], [0], [1], [0, 0, 1, 1], [], []>} : vector<128x128xf32>, vector<128x128xf32>, vector<128x128xf32> -> vector<128x128xf32>
    %c0_4 = arith.constant 0 : index
    %c0_5 = arith.constant 0 : index
    %6 = vector.load %arg7[%c0_4, %c0_5] : memref<1x128xf32, #tpu.memory_space<vmem>>, vector<1x128xf32>
    %7 = vector.broadcast %6 : vector<1x128xf32> to vector<128x128xf32>
    %8 = arith.addf %5, %7 : vector<128x128xf32>
    %9 = math.tanh %8 : vector<128x128xf32>
    %c0_6 = arith.constant 0 : index
    %c0_7 = arith.constant 0 : index
    %10 = vector.load %arg8[%c0_6, %c0_7] : memref<128x128xf32, #tpu.memory_space<vmem>>, vector<128x128xf32>
    %cst_8 = arith.constant dense<0.000000e+00> : vector<128x128xf32>
    %11 = tpu.matmul %9, %10, %cst_8 {dimension_numbers = #tpu.dot_dimension_numbers<[1], [0], [0], [1], [0, 0, 1, 1], [], []>} : vector<128x128xf32>, vector<128x128xf32>, vector<128x128xf32> -> vector<128x128xf32>
    %c0_9 = arith.constant 0 : index
    %c0_10 = arith.constant 0 : index
    %12 = vector.load %arg9[%c0_9, %c0_10] : memref<1x128xf32, #tpu.memory_space<vmem>>, vector<1x128xf32>
    %13 = vector.broadcast %12 : vector<1x128xf32> to vector<128x128xf32>
    %14 = arith.addf %11, %13 : vector<128x128xf32>
    %c0_11 = arith.constant 0 : index
    %c0_12 = arith.constant 0 : index
    %c0_13 = arith.constant 0 : index
    %15 = vector.load %arg4[%c0_11, %c0_12, %c0_13] : memref<1x1x128xf32, #tpu.memory_space<vmem>>, vector<1x1x128xf32>
    %16 = vector.shape_cast %15 : vector<1x1x128xf32> to vector<1x128xf32>
    %cst_14 = arith.constant 0.628318548 : f32
    %17 = vector.broadcast %cst_14 : f32 to vector<1x128xf32>
    %18 = arith.mulf %16, %17 : vector<1x128xf32>
    %19 = math.cos %18 : vector<1x128xf32>
    %cst_15 = arith.constant 1.000000e+00 : f32
    %20 = vector.broadcast %cst_15 : f32 to vector<1x128xf32>
    %21 = arith.addf %19, %20 : vector<1x128xf32>
    %cst_16 = arith.constant 5.000000e-01 : f32
    %22 = vector.broadcast %cst_16 : f32 to vector<1x128xf32>
    %23 = arith.mulf %22, %21 : vector<1x128xf32>
    %cst_17 = arith.constant 5.000000e+00 : f32
    %24 = vector.broadcast %cst_17 : f32 to vector<1x128xf32>
    %25 = arith.cmpf olt, %16, %24 : vector<1x128xf32>
    %cst_18 = arith.constant 0.000000e+00 : f32
    %26 = vector.broadcast %cst_18 : f32 to vector<1x128xf32>
    %27 = arith.select %25, %23, %26 : vector<1x128xi1>, vector<1x128xf32>
    %28 = tpu.iota {dimensions = array<i32: 0>} : vector<16x128xi32>
    %c0_19 = arith.constant 0 : index
    %c0_20 = arith.constant 0 : index
    %c0_21 = arith.constant 0 : index
    %29 = vector.load %arg2[%c0_19, %c0_20, %c0_21] : memref<1x1x128xi32, #tpu.memory_space<vmem>>, vector<1x1x128xi32>
    %30 = vector.shape_cast %29 : vector<1x1x128xi32> to vector<1x128xi32>
    %31 = vector.broadcast %30 : vector<1x128xi32> to vector<16x128xi32>
    %32 = arith.cmpi eq, %28, %31 : vector<16x128xi32>
    %cst_22 = arith.constant 0.000000e+00 : f32
    %33 = vector.shape_cast %27 : vector<1x128xf32> to vector<1x128xf32>
    %34 = vector.broadcast %33 : vector<1x128xf32> to vector<16x128xf32>
    %35 = vector.broadcast %cst_22 : f32 to vector<16x128xf32>
    %36 = arith.select %32, %34, %35 : vector<16x128xi1>, vector<16x128xf32>
    %37 = arith.truncf %36 : vector<16x128xf32> to vector<16x128xbf16>
    %c0_23 = arith.constant 0 : index
    %c0_24 = arith.constant 0 : index
    %38 = vector.load %arg16[%c0_23, %c0_24] : memref<16x128xbf16, #tpu.memory_space<vmem>>, vector<16x128xbf16>
    %cst_25 = arith.constant dense<0.000000e+00> : vector<128x128xf32>
    %39 = tpu.matmul %37, %38, %cst_25 {dimension_numbers = #tpu.dot_dimension_numbers<[0], [0], [1], [1], [0, 1, 1, 1], [], []>} : vector<16x128xbf16>, vector<16x128xbf16>, vector<128x128xf32> -> vector<128x128xf32>
    %40 = arith.mulf %39, %14 : vector<128x128xf32>
    %41 = arith.truncf %40 : vector<128x128xf32> to vector<128x128xbf16>
    %c0_26 = arith.constant 0 : index
    %c0_27 = arith.constant 0 : index
    %c0_28 = arith.constant 0 : index
    %42 = vector.load %arg3[%c0_26, %c0_27, %c0_28] : memref<1x1x128xi32, #tpu.memory_space<vmem>>, vector<1x1x128xi32>
    %43 = vector.shape_cast %42 : vector<1x1x128xi32> to vector<1x128xi32>
    %44 = vector.broadcast %43 : vector<1x128xi32> to vector<16x128xi32>
    %45 = arith.cmpi eq, %28, %44 : vector<16x128xi32>
    %46 = arith.extui %45 : vector<16x128xi1> to vector<16x128xi32>
    %47 = arith.sitofp %46 : vector<16x128xi32> to vector<16x128xf32>
    %48 = arith.truncf %47 : vector<16x128xf32> to vector<16x128xbf16>
    %c0_29 = arith.constant 0 : index
    %c0_30 = arith.constant 0 : index
    %49 = vector.load %arg17[%c0_29, %c0_30] : memref<16x128xf32, #tpu.memory_space<vmem>>, vector<16x128xf32>
    %cst_31 = arith.constant dense<0.000000e+00> : vector<16x128xf32>
    %50 = tpu.matmul %48, %41, %cst_31 {dimension_numbers = #tpu.dot_dimension_numbers<[1], [0], [0], [1], [0, 0, 1, 1], [], []>} : vector<16x128xbf16>, vector<128x128xbf16>, vector<16x128xf32> -> vector<16x128xf32>
    %51 = arith.addf %49, %50 : vector<16x128xf32>
    %c0_32 = arith.constant 0 : index
    %c0_33 = arith.constant 0 : index
    %52 = vector.load %arg17[%c0_32, %c0_33] : memref<16x128xf32, #tpu.memory_space<vmem>>, vector<16x128xf32>
    tpu.vector_store %arg17[%c0_32, %c0_33], %51 {strides = array<i32>} : memref<16x128xf32, #tpu.memory_space<vmem>>, vector<16x128xf32>,
    %c2_i32 = arith.constant 2 : i32
    %53 = arith.cmpi eq, %arg0, %c2_i32 : i32
    %54 = arith.extui %53 : i1 to i32
    %c0_i32_34 = arith.constant 0 : i32
    %55 = arith.cmpi ne, %54, %c0_i32_34 : i32
    scf.if %55 {
      %c0_35 = arith.constant 0 : index
      %c0_36 = arith.constant 0 : index
      %56 = vector.load %arg17[%c0_35, %c0_36] : memref<16x128xf32, #tpu.memory_space<vmem>>, vector<16x128xf32>
      %c0_37 = arith.constant 0 : index
      %c0_38 = arith.constant 0 : index
      %57 = vector.load %arg11[%c0_37, %c0_38] : memref<128x128xf32, #tpu.memory_space<vmem>>, vector<128x128xf32>
      %cst_39 = arith.constant dense<0.000000e+00> : vector<16x128xf32>
      %58 = tpu.matmul %56, %57, %cst_39 {dimension_numbers = #tpu.dot_dimension_numbers<[1], [0], [0], [1], [0, 0, 1, 1], [], []>} : vector<16x128xf32>, vector<128x128xf32>, vector<16x128xf32> -> vector<16x128xf32>
      %c0_40 = arith.constant 0 : index
      %c0_41 = arith.constant 0 : index
      %59 = vector.load %arg12[%c0_40, %c0_41] : memref<1x128xf32, #tpu.memory_space<vmem>>, vector<1x128xf32>
      %60 = vector.broadcast %59 : vector<1x128xf32> to vector<16x128xf32>
      %61 = arith.addf %58, %60 : vector<16x128xf32>
      %62 = math.tanh %61 : vector<16x128xf32>
      %c0_42 = arith.constant 0 : index
      %c0_43 = arith.constant 0 : index
      %63 = vector.load %arg13[%c0_42, %c0_43] : memref<128x128xf32, #tpu.memory_space<vmem>>, vector<128x128xf32>
      %cst_44 = arith.constant dense<0.000000e+00> : vector<16x128xf32>
      %64 = tpu.matmul %62, %63, %cst_44 {dimension_numbers = #tpu.dot_dimension_numbers<[1], [0], [0], [1], [0, 0, 1, 1], [], []>} : vector<16x128xf32>, vector<128x128xf32>, vector<16x128xf32> -> vector<16x128xf32>
      %c0_45 = arith.constant 0 : index
      %c0_46 = arith.constant 0 : index
      %65 = vector.load %arg14[%c0_45, %c0_46] : memref<1x128xf32, #tpu.memory_space<vmem>>, vector<1x128xf32>
      %66 = vector.broadcast %65 : vector<1x128xf32> to vector<16x128xf32>
      %67 = arith.addf %64, %66 : vector<16x128xf32>
      %c0_47 = arith.constant 0 : index
      %c0_48 = arith.constant 0 : index
      %68 = vector.load %arg15[%c0_47, %c0_48] : memref<16x128xf32, #tpu.memory_space<vmem>>, vector<16x128xf32>
      tpu.vector_store %arg15[%c0_47, %c0_48], %67 {strides = array<i32>} : memref<16x128xf32, #tpu.memory_space<vmem>>, vector<16x128xf32>,
    } else {
    }
    return
  }
  func.func @transform_0(%arg0: i32) -> (i32, i32) {
    %c0_i32 = arith.constant 0 : i32
    %c0_i32_0 = arith.constant 0 : i32
    %c0_i32_1 = arith.constant 0 : i32
    return %c0_i32, %c0_i32_0 : i32, i32
  }
  func.func @transform_1(%arg0: i32) -> (i32, i32, i32) {
    %c0_i32 = arith.constant 0 : i32
    %c0_i32_0 = arith.constant 0 : i32
    %c0_i32_1 = arith.constant 0 : i32
    return %arg0, %c0_i32, %c0_i32_0 : i32, i32, i32
  }
  func.func @transform_2(%arg0: i32) -> (i32, i32, i32) {
    %c0_i32 = arith.constant 0 : i32
    %c0_i32_0 = arith.constant 0 : i32
    %c0_i32_1 = arith.constant 0 : i32
    return %arg0, %c0_i32, %c0_i32_0 : i32, i32, i32
  }
  func.func @transform_3(%arg0: i32) -> (i32, i32, i32) {
    %c0_i32 = arith.constant 0 : i32
    %c0_i32_0 = arith.constant 0 : i32
    %c0_i32_1 = arith.constant 0 : i32
    return %arg0, %c0_i32, %c0_i32_0 : i32, i32, i32
  }
  func.func @transform_4(%arg0: i32) -> (i32, i32) {
    %c0_i32 = arith.constant 0 : i32
    %c0_i32_0 = arith.constant 0 : i32
    return %arg0, %c0_i32 : i32, i32
  }
  func.func @transform_5(%arg0: i32) -> (i32, i32) {
    %c0_i32 = arith.constant 0 : i32
    %c0_i32_0 = arith.constant 0 : i32
    %c0_i32_1 = arith.constant 0 : i32
    return %c0_i32, %c0_i32_0 : i32, i32
  }
  func.func @transform_6(%arg0: i32) -> (i32, i32) {
    %c0_i32 = arith.constant 0 : i32
    %c0_i32_0 = arith.constant 0 : i32
    %c0_i32_1 = arith.constant 0 : i32
    return %c0_i32, %c0_i32_0 : i32, i32
  }
  func.func @transform_7(%arg0: i32) -> (i32, i32) {
    %c0_i32 = arith.constant 0 : i32
    %c0_i32_0 = arith.constant 0 : i32
    %c0_i32_1 = arith.constant 0 : i32
    return %c0_i32, %c0_i32_0 : i32, i32
  }
  func.func @transform_8(%arg0: i32) -> (i32, i32) {
    %c0_i32 = arith.constant 0 : i32
    %c0_i32_0 = arith.constant 0 : i32
    %c0_i32_1 = arith.constant 0 : i32
    return %c0_i32, %c0_i32_0 : i32, i32
  }
  func.func @transform_9(%arg0: i32) -> (i32, i32) {
    %c0_i32 = arith.constant 0 : i32
    %c0_i32_0 = arith.constant 0 : i32
    %c0_i32_1 = arith.constant 0 : i32
    return %c0_i32, %c0_i32_0 : i32, i32
  }
  func.func @transform_10(%arg0: i32) -> (i32, i32) {
    %c0_i32 = arith.constant 0 : i32
    %c0_i32_0 = arith.constant 0 : i32
    %c0_i32_1 = arith.constant 0 : i32
    return %c0_i32, %c0_i32_0 : i32, i32
  }
  func.func @transform_11(%arg0: i32) -> (i32, i32) {
    %c0_i32 = arith.constant 0 : i32
    %c0_i32_0 = arith.constant 0 : i32
    %c0_i32_1 = arith.constant 0 : i32
    return %c0_i32, %c0_i32_0 : i32, i32
  }
  func.func @transform_12(%arg0: i32) -> (i32, i32) {
    %c0_i32 = arith.constant 0 : i32
    %c0_i32_0 = arith.constant 0 : i32
    %c0_i32_1 = arith.constant 0 : i32
    return %c0_i32, %c0_i32_0 : i32, i32
  }
  func.func @transform_13(%arg0: i32) -> (i32, i32) {
    %c0_i32 = arith.constant 0 : i32
    %c0_i32_0 = arith.constant 0 : i32
    %c0_i32_1 = arith.constant 0 : i32
    return %c0_i32, %c0_i32_0 : i32, i32
  }
  func.func @transform_14(%arg0: i32) -> (i32, i32) {
    %c0_i32 = arith.constant 0 : i32
    %c0_i32_0 = arith.constant 0 : i32
    %c0_i32_1 = arith.constant 0 : i32
    return %c0_i32, %c0_i32_0 : i32, i32
  }
}

</mosaic_0001>

<bundles_post_ra>
// kernel: tpu_custom_call.1
= control target key start
LH: loop header
LB: loop body
LE: loop exit
PB: predicated region body
PF: predicated region fallthrough
CT: control target
= control target key end

     0   :  { %s2730_s0 = inlined_call_operand.hbm [shape: f32[16,128], index: 0, kind: input, shape index: {}]   ;;  %s2731_s1 = inlined_call_operand.hbm [shape: s32[3,1,128], index: 1, kind: input, shape index: {}]   ;;  %s2732_s2 = inlined_call_operand.hbm [shape: s32[3,1,128], index: 2, kind: input, shape index: {}]   ;;  %s2733_s3 = inlined_call_operand.hbm [shape: f32[3,1,128], index: 3, kind: input, shape index: {}]   ;;  %s2734_s4 = inlined_call_operand.hbm [shape: f32[384,128], index: 4, kind: input, shape index: {}]   ;;  %s2735_s5 = inlined_call_operand.hbm [shape: f32[128,128], index: 5, kind: input, shape index: {}]   ;;  %s2736_s6 = inlined_call_operand.vmem [shape: f32[1,128], index: 6, kind: input, shape index: {}]   ;;  %s2737_s7 = inlined_call_operand.hbm [shape: f32[128,128], index: 7, kind: input, shape index: {}]   ;;  %s2738_s8 = inlined_call_operand.vmem [shape: f32[1,128], index: 8, kind: input, shape index: {}]   ;;  %s2739_s9 = inlined_call_operand.hbm [shape: f32[128,128], index: 9, kind: input, shape index: {}]   ;;  %s2740_s10 = inlined_call_operand.hbm [shape: f32[128,128], index: 10, kind: input, shape index: {}]   ;;  %s2741_s11 = inlined_call_operand.vmem [shape: f32[1,128], index: 11, kind: input, shape index: {}]   ;;  %s2742_s12 = inlined_call_operand.hbm [shape: f32[128,128], index: 12, kind: input, shape index: {}]   ;;  %s2743_s13 = inlined_call_operand.vmem [shape: f32[1,128], index: 13, kind: input, shape index: {}]   ;;  %s2744_s14 = inlined_call_operand.hbm [shape: f32[16,128], index: 14, kind: output, shape index: {}]  }
   0x1   :  { %2752 = sst [smem:[#allocation32_spill]] %s2731_s1 }
   0x2   :  { %2753 = sst [smem:[#allocation33_spill]] %s2735_s5 }
   0x3   :  { %2754 = sst [smem:[#allocation34_spill]] %s2736_s6 }
   0x4   :  { %2755 = sst [smem:[#allocation35_spill]] %s2738_s8 }
   0x5   :  { %2756 = sst [smem:[#allocation36_spill]] %s2739_s9 }
   0x6   :  { %2757 = sst [smem:[#allocation37_spill]] %s2741_s11 }
   0x7   :  { %2758 = sst [smem:[#allocation38_spill]] %s2743_s13 }
   0x8   :  { %2759 = sst [smem:[#allocation39_spill]] %s2744_s14 }
   0x9   :  { %19 = vsyncpa [#allocation5], 0 }
   0xa   :  { %20 = vsyncpa [#allocation8], 0 }
   0xb   :  { %22 = vsyncpa [#allocation8 + $0x1], 0 }
   0xc   :  { %23 = vsyncpa [#allocation11], 0 }
   0xd   :  { %25 = vsyncpa [#allocation11 + $0x1], 0 }
   0xe   :  { %26 = vsyncpa [#allocation14], 0 }
   0xf   :  { %27 = vsyncpa [#allocation17], 0 }
  0x10   :  { %28 = vsyncpa [#allocation20], 0 }
  0x11   :  { %29 = vsyncpa [#allocation6], 0  ;;  %s2314_s29 = smov 0   ;;  %s2316_s30 = smov 0  }
  0x12   :  { %s2318_s15 = smov 0   ;;  %s2320_s16 = smov 0  }
  0x13 LB: > { %2760 = sst [smem:[#allocation29_spill]] %s2213_s15  ;;  %s2335_s17 = sadd.s32 4294967295, %s2217_s16   ;;  %s2217_s16 = sphi %s2320_s16, %s2782_s16   ;;  %s2213_s15 = sphi %s2318_s15, %s2784_s15   ;;  %s2209_s30 = sphi %s2316_s30, %s2786_s30   ;;  %s2205_s29 = sphi %s2314_s29, %s2785_s29  }
  0x14   : > { %p1523_p0 = scmp.ge.s32.totalorder %s2217_s16, 1  ;;  %p77_p1 = scmp.eq.s32.totalorder %s2335_s17, 0 }
  0x15   : > { %p375_p2 = scmp.lt.s32.totalorder %s2217_s16, 4  ;;  %p1524_p3 = scmp.ne.s32.totalorder %s2335_s17, 0 }
  0x16   : > { %s2761_s5 = sld [smem:[#allocation33_spill]]  ;;  %s2219_s22 = smov [#allocation13]  }
  0x17   : > { %p2344_p4 = pnand %p1523_p0, %p375_p2  ;;  %s402_s23 = sshll.u32 %s2219_s22, 4  ;;  %s403_s23 = int_to_ptr.vmem [resolvable:$true] %s402_s23 }
  0x18   : > { %s2763_s9 = sld [smem:[#allocation36_spill]]  ;;  %s2220_s28 = smov [#allocation16]  }
  0x19   : > { %p1690_p5 = pneg %p2344_p4  ;;  %s436_s18 = sshll.u32 %s2220_s28, 4  ;;  %s437_s18 = int_to_ptr.vmem [resolvable:$true] %s436_s18 }
  0x1a   : > { %s2745_s19 = smov 128   ;;  %s2747_s22 = smov 8  }
  0x1b   : > { %p2355_p6 = pnand %p1690_p5, %p77_p1  ;;  %s2370_s24 = sadd.s32 1, %s2217_s16  }
  0x1c   : > { %s400_s20 = sshll.u32 %s2761_s5, 4  ;;  %2765 = sst [smem:[#allocation30_spill]] %s2370_s24  ;;  %s401_s20 = int_to_ptr.hbm [resolvable:$true] %s400_s20 }
  0x1d   : > { %1696 = dma.hbm_to_vmem [thread:$0]  (!%p2355_p6), %s401_s20, 2048, %s403_s23, [#allocation14], %s2745_s19, %s2745_s19, %s2747_s22  }
  0x1e   : > { %s434_s26 = sshll.u32 %s2763_s9, 4  ;;  %s63_s25 = sadd.s32 1, %s2213_s15  ;;  %s435_s26 = int_to_ptr.hbm [resolvable:$true] %s434_s26 }
  0x1f   : > { %1702 = dma.hbm_to_vmem [thread:$0]  (!%p2355_p6), %s435_s26, 2048, %s437_s18, [#allocation17], %s2745_s19, %s2745_s19, %s2747_s22  }
  0x20   : > { %s60_s28 = ssub.s32 %s2217_s16, %s2370_s24  ;;  %p70_p7 = scmp.ne.s32.totalorder %s2213_s15, %s2209_s30 }
  0x21   : > { %p61_p8 = scmp.eq.s32.totalorder %s60_s28, 0  ;;  %p71_p9 = scmp.eq.s32.totalorder %s2217_s16, 0 }
  0x22   : > { %p76_p10 = scmp.ne.s32.totalorder %s2209_s30, %s2205_s29  ;;  %p1728_p11 = scmp.lt.s32.totalorder %s2217_s16, 3 }
  0x23   : > { %s2382_s5 = scalar_select %p61_p8, %s2213_s15, %s63_s25  }
  0x24   : > { %p72_p12 = por %p71_p9, %p70_p7  ;;  %p2386_p13 = por %p77_p1, %p76_p10 }
  0x25   : > { %2766 = sst [smem:[#allocation31_spill]] %s2382_s5  ;;  %s2392_s26 = sand.u32 1, %s2213_s15  }
  0x26   : > { %s2768_s1 = sld [smem:[#allocation32_spill]]  ;;  %s487_s22 = scalar_lea.vmem [#allocation7], %s2392_s26 }
  0x27   : > { %s494_s29 = sshll.u32 %s487_s22, 4  ;;  %p2399_p0 = pnand %p1728_p11, %p72_p12  ;;  %s495_s29 = int_to_ptr.vmem [resolvable:$true] %s494_s29 }
  0x28   : > { %s2770_s5 = sand.u32 1, %s2217_s16  }
  0x29   : > { %s2406_s15 = scalar_lea.sflag [#allocation8], %s2770_s5  ;;  %p1895_p5 = pneg %p2399_p0 }
  0x2c   : > { %s490_s28 = scalar_lea.hbm %s2768_s1, %s2217_s16 }
  0x2d   : > { %s492_s9 = sshll.u32 %s490_s28, 4  ;;  %s1898_s28 = scalar_lea.hbm %s2768_s1, 3  ;;  %s493_s9 = int_to_ptr.hbm [resolvable:$true] %s492_s9 }
  0x2e   : > { %s1891_s24 = sshra.s32 %s493_s9, 4  ;;  %s1892_s24 = int_to_ptr.hbm [resolvable:$true] %s1891_s24 }
  0x2f   : > { %s1893_s19 = scalar_lea.hbm %s1892_s24, 1  ;;  %p1899_p9 = scmp.lt.s32.totalorder %s1892_s24, %s2768_s1 }
  0x30   : > { %p1894_p2 = scmp.ne.s32.totalorder %s1892_s24, %s1893_s19  ;;  %p1900_p10 = scmp.lt.s32.totalorder %s1898_s28, %s1893_s19 }
  0x32   : > { %p1896_p7 = pnand %p1895_p5, %p1894_p2  ;;  %p1901_p11 = por %p1900_p10, %p1899_p9 }
  0x34   : > { %p1897_p8 = pneg %p1896_p7 }
  0x36   : > { %p1902_p12 = pnand %p1901_p11, %p1897_p8 }
  0x38   : > { %1905 = shalt.err (!%p1902_p12)
}
  0x39   : > { %1712 = dma.hbm_to_vmem [thread:$0]  (!%p2399_p0), %s493_s9, 16, %s495_s29, %s2406_s15  }
  0x3a   : > { %s524_s22 = scalar_lea.hbm %s2733_s3, %s2217_s16  ;;  %s521_s18 = scalar_lea.vmem [#allocation10], %s2392_s26 }
  0x3b   : > { %s528_s11 = sshll.u32 %s521_s18, 4  ;;  %s526_s13 = sshll.u32 %s524_s22, 4  ;;  %s529_s11 = int_to_ptr.vmem [resolvable:$true] %s528_s11  ;;  %s527_s13 = int_to_ptr.hbm [resolvable:$true] %s526_s13 }
  0x3c   : > { %s386_s19 = sshll.u32 %s2730_s0, 4  ;;  %s2771_s28 = sand.u32 1, %s2217_s16   ;;  %s387_s19 = int_to_ptr.hbm [resolvable:$true] %s386_s19 }
  0x3d   : > { %s2432_s1 = scalar_lea.sflag [#allocation11], %s2771_s28  ;;  %s1921_s8 = sshra.s32 %s527_s13, 4  ;;  %s1922_s8 = int_to_ptr.hbm [resolvable:$true] %s1921_s8 }
  0x3e   : > { %s1923_s6 = scalar_lea.hbm %s1922_s8, 1  ;;  %s1928_s29 = scalar_lea.hbm %s2733_s3, 3 }
  0x3f   : > { %p1924_p2 = scmp.ne.s32.totalorder %s1922_s8, %s1923_s6  ;;  %p1929_p9 = scmp.lt.s32.totalorder %s1922_s8, %s2733_s3 }
  0x40   : > { %p1930_p10 = scmp.lt.s32.totalorder %s1928_s29, %s1923_s6 }
  0x41   : > { %p1926_p7 = pnand %p1924_p2, %p1895_p5 }
  0x42   : > { %p1931_p11 = por %p1930_p10, %p1929_p9 }
  0x43   : > { %p1927_p8 = pneg %p1926_p7 }
  0x45   : > { %p1932_p12 = pnand %p1931_p11, %p1927_p8 }
  0x47   : > { %1935 = shalt.err (!%p1932_p12)
}
  0x48   : > { %1718 = dma.hbm_to_vmem [thread:$0]  (!%p2399_p0), %s527_s13, 16, %s529_s11, %s2432_s1  }
  0x49   : > { %s2223_s18 = smov [#allocation4]   ;;  %s417_s9 = sshll.u32 %s2737_s7, 4  ;;  %s418_s9 = int_to_ptr.hbm [resolvable:$true] %s417_s9 }
  0x4a   : > { %s388_s14 = sshll.u32 %s2223_s18, 4  ;;  %s2772_s6 = smov 8   ;;  %s389_s14 = int_to_ptr.vmem [resolvable:$true] %s388_s14 }
  0x4b   : > { %s2773_s8 = smov 128   ;;  %s448_s11 = sshll.u32 %s2740_s10, 4  ;;  %s449_s11 = int_to_ptr.hbm [resolvable:$true] %s448_s11 }
  0x4c   : > { %1693 = dma.hbm_to_vmem [thread:$0]  (!%p2355_p6), %s387_s19, 256, %s389_s14, [#allocation5], %s2773_s8, %s2773_s8, %s2772_s6  }
  0x4d   : > { %s2224_s13 = smov [#allocation15]   ;;  %s2225_s22 = smov [#allocation18]  }
  0x4e   : > { %s419_s5 = sshll.u32 %s2224_s13, 4  ;;  %s450_s18 = sshll.u32 %s2225_s22, 4  ;;  %s420_s5 = int_to_ptr.vmem [resolvable:$true] %s419_s5  ;;  %s451_s18 = int_to_ptr.vmem [resolvable:$true] %s450_s18 }
  0x4f   : > { %1699 = dma.hbm_to_vmem [thread:$0]  (!%p2355_p6), %s418_s9, 2048, %s420_s5, [#allocation14], %s2773_s8, %s2773_s8, %s2772_s6  }
  0x50   : > { %s465_s19 = sshll.u32 %s2742_s12, 4  ;;  %s2226_s14 = smov [#allocation19]   ;;  %s466_s19 = int_to_ptr.hbm [resolvable:$true] %s465_s19 }
  0x51   : > { %1705 = dma.hbm_to_vmem [thread:$0]  (!%p2355_p6), %s449_s11, 2048, %s451_s18, [#allocation17], %s2773_s8, %s2773_s8, %s2772_s6  }
  0x52   : > { %s467_s23 = sshll.u32 %s2226_s14, 4  ;;  %s507_s9 = scalar_lea.hbm %s2732_s2, %s2217_s16  ;;  %s468_s23 = int_to_ptr.vmem [resolvable:$true] %s467_s23 }
  0x53   : > { %s509_s5 = sshll.u32 %s507_s9, 4  ;;  %s504_s22 = scalar_lea.vmem [#allocation9], %s2392_s26  ;;  %s510_s5 = int_to_ptr.hbm [resolvable:$true] %s509_s5 }
  0x54   : > { %1708 = dma.hbm_to_vmem [thread:$0]  (!%p2355_p6), %s466_s19, 2048, %s468_s23, [#allocation20], %s2773_s8, %s2773_s8, %s2772_s6  }
  0x55   : > { %s511_s24 = sshll.u32 %s504_s22, 4  ;;  %s2071_s28 = sshra.s32 %s510_s5, 4  ;;  %s512_s24 = int_to_ptr.vmem [resolvable:$true] %s511_s24  ;;  %s2072_s28 = int_to_ptr.hbm [resolvable:$true] %s2071_s28 }
  0x56   : > { %s2073_s11 = scalar_lea.hbm %s2072_s28, 1  ;;  %s2078_s27 = scalar_lea.hbm %s2732_s2, 3 }
  0x57   : > { %p2074_p2 = scmp.ne.s32.totalorder %s2072_s28, %s2073_s11  ;;  %p2079_p6 = scmp.lt.s32.totalorder %s2072_s28, %s2732_s2 }
  0x58   : > { %p2080_p9 = scmp.lt.s32.totalorder %s2078_s27, %s2073_s11 }
  0x59   : > { %p2076_p7 = pnand %p2074_p2, %p1895_p5 }
  0x5a   : > { %p2081_p10 = por %p2080_p9, %p2079_p6 }
  0x5b   : > { %p2077_p8 = pneg %p2076_p7 }
  0x5d   : > { %p2082_p11 = pnand %p2081_p10, %p2077_p8 }
  0x5f   : > { %2085 = shalt.err (!%p2082_p11)
}
  0x60   : > { %1715 = dma.hbm_to_vmem [thread:$0]  (!%p2399_p0), %s510_s5, 16, %s512_s24, %s2406_s15  }
  0x61   : > { %s1567_s19 = sshll.u32 %s2217_s16, 7  ;;  %s2774_s23 = sshll.u32 %s2392_s26, 7 }
  0x62   : > { %s539_s9 = scalar_lea.vmem [#allocation12], %s2774_s23  ;;  %s544_s29 = scalar_lea.hbm %s2734_s4, %s1567_s19 }
  0x63   : > { %s547_s22 = sshll.u32 %s539_s9, 4  ;;  %s545_s28 = sshll.u32 %s544_s29, 4  ;;  %s548_s22 = int_to_ptr.vmem [resolvable:$true] %s547_s22  ;;  %s546_s28 = int_to_ptr.hbm [resolvable:$true] %s545_s28 }
  0x64   : > { %s2101_s11 = sshra.s32 %s546_s28, 4  ;;  %s2108_s26 = scalar_lea.hbm %s2734_s4, 384  ;;  %s2102_s11 = int_to_ptr.hbm [resolvable:$true] %s2101_s11 }
  0x65   : > { %s2103_s27 = scalar_lea.hbm %s2102_s11, 128  ;;  %p2109_p8 = scmp.lt.s32.totalorder %s2102_s11, %s2734_s4 }
  0x66   : > { %p2104_p12 = scmp.ne.s32.totalorder %s2102_s11, %s2103_s27  ;;  %p2110_p6 = scmp.lt.s32.totalorder %s2108_s26, %s2103_s27 }
  0x68   : > { %p2106_p2 = pnand %p2104_p12, %p1895_p5  ;;  %p2111_p9 = por %p2110_p6, %p2109_p8 }
  0x6a   : > { %p2107_p7 = pneg %p2106_p2 }
  0x6c   : > { %p2112_p10 = pnand %p2111_p9, %p2107_p7 }
  0x6e   : > { %2115 = shalt.err (!%p2112_p10)
}
  0x6f   : > { %1721 = dma.hbm_to_vmem [thread:$0]  (!%p2399_p0), %s546_s28, 2048, %s548_s22, %s2432_s1, %s2773_s8, %s2773_s8, %s2772_s6  }
  0x70   : > { %559 = sbr.rel (%p2344_p4) target bundleno = 1328 (0x530), region = 76 }
  0x75   : > { %2176 = dma.done.wait (%p77_p1), [#allocation5], 256  }
  0x76   : > { %2178 = vsyncadd (%p77_p1), [#allocation5], 4294967040  ;;  %s566_s13 = sand.u32 1, %s2335_s17   ;;  %s2521_s19 = sand.u32 1, %s2209_s30  }
  0x77   : > { %s567_s25 = scalar_lea.sflag [#allocation8], %s566_s13  ;;  %s569_s23 = scalar_lea.vmem [#allocation7], %s2521_s19 }
  0x78   : > { %2180 = dma.done.wait (%p2386_p13), %s567_s25, 32  }
  0x79   : > { %2182 = vsyncadd (%p2386_p13), %s567_s25, 4294967264  ;;  %s578_s1 = scalar_lea.vmem [#allocation9], %s2521_s19  ;;  %s585_s21 = scalar_lea.sflag [#allocation11], %s566_s13 }
  0x7a   : > { %s587_s6 = scalar_lea.vmem [#allocation10], %s2521_s19 }
  0x7b   : > { %2184 = dma.done.wait (%p2386_p13), %s585_s21, 2064  }
  0x7c   : > { %2186 = vsyncadd (%p2386_p13), %s585_s21, 4294965232  ;;  %s1536_s8 = sshll.u32 %s2521_s19, 7 }
  0x7d   : > { %s2535_s9 = scalar_lea.vmem [#allocation12], %s1536_s8 }
  0x7e   : > { %2188 = dma.done.wait (%p77_p1), [#allocation14], 4096  }
  0x7f   : > { %2190 = vsyncadd (%p77_p1), [#allocation14], 4294963200 }
  0x80   : > { %2192 = dma.done.wait (%p77_p1), [#allocation17], 4096  }
  0x81   : > { %2194 = vsyncadd (%p77_p1), [#allocation17], 4294963200 }
  0x82   : > { %2196 = dma.done.wait (%p77_p1), [#allocation20], 2048  }
  0x83   : > { %2198 = vsyncadd (%p77_p1), [#allocation20], 4294965248  ;;  %680 = sbr.rel (%p1524_p3) target bundleno = 297 (0x129), region = 120 }
  0x88   : > { %v698_v0 = vld [vmem:[#allocation16 + $0x78] sm:$0xff]  ;;  %v697_v1 = vld [vmem:[#allocation16 + $0x70] sm:$0xff]  ;;  %v696_v2 = vld [vmem:[#allocation16 + $0x68] sm:$0xff]  ;;  %v2227_v18 = vmov 0.0  }
  0x89   : > { %699 = vmatpush.msra.mxu0 %v698_v0  ;;  %1574 = vmatpush.msra.mxu1 %v698_v0  ;;  %v695_v3 = vld [vmem:[#allocation16 + $0x60] sm:$0xff]  ;;  %v694_v4 = vld [vmem:[#allocation16 + $0x58] sm:$0xff]  ;;  %v693_v5 = vld [vmem:[#allocation16 + $0x50] sm:$0xff]  ;;  %726 = vst [vmem:[#allocation3] sm:$0xff] %v2227_v18 }
  0x8a   : > { %v692_v6 = vld [vmem:[#allocation16 + $0x48] sm:$0xff]  ;;  %v691_v7 = vld [vmem:[#allocation16 + $0x40] sm:$0xff]  ;;  %v690_v8 = vld [vmem:[#allocation16 + $0x38] sm:$0xff]  ;;  %727 = vst [vmem:[#allocation3 + $0x8] sm:$0xff] %v2227_v18 }
  0x8b   : > { %700 = vmatpush.msra.mxu0 %v697_v1  ;;  %1575 = vmatpush.msra.mxu1 %v697_v1  ;;  %v689_v9 = vld [vmem:[#allocation16 + $0x30] sm:$0xff]  ;;  %v688_v10 = vld [vmem:[#allocation16 + $0x28] sm:$0xff]  ;;  %v687_v11 = vld [vmem:[#allocation16 + $0x20] sm:$0xff] }
  0x8c   : > { %v686_v12 = vld [vmem:[#allocation16 + $0x18] sm:$0xff]  ;;  %v685_v13 = vld [vmem:[#allocation16 + $0x10] sm:$0xff]  ;;  %v684_v14 = vld [vmem:[#allocation16 + $0x8] sm:$0xff] }
  0x8d   : > { %701 = vmatpush.msra.mxu0 %v696_v2  ;;  %1576 = vmatpush.msra.mxu1 %v696_v2  ;;  %v683_v15 = vld [vmem:[#allocation16] sm:$0xff]  ;;  %v681_v16 = vld [vmem:[#allocation4] sm:$0xff]  ;;  %v682_v17 = vld [vmem:[#allocation4 + $0x8] sm:$0xff] }
  0x8f   : > { %702 = vmatpush.msra.mxu0 %v695_v3  ;;  %1577 = vmatpush.msra.mxu1 %v695_v3 }
  0x91   : > { %703 = vmatpush.msra.mxu0 %v694_v4  ;;  %1578 = vmatpush.msra.mxu1 %v694_v4 }
  0x93   : > { %704 = vmatpush.msra.mxu0 %v693_v5  ;;  %1579 = vmatpush.msra.mxu1 %v693_v5 }
  0x95   : > { %705 = vmatpush.msra.mxu0 %v692_v6  ;;  %1580 = vmatpush.msra.mxu1 %v692_v6 }
  0x97   : > { %706 = vmatpush.msra.mxu0 %v691_v7  ;;  %1581 = vmatpush.msra.mxu1 %v691_v7 }
  0x99   : > { %707 = vmatpush.msra.mxu0 %v690_v8  ;;  %1582 = vmatpush.msra.mxu1 %v690_v8 }
  0x9b   : > { %708 = vmatpush.msra.mxu0 %v689_v9  ;;  %1583 = vmatpush.msra.mxu1 %v689_v9 }
  0x9d   : > { %709 = vmatpush.msra.mxu0 %v688_v10  ;;  %1584 = vmatpush.msra.mxu1 %v688_v10 }
  0x9f   : > { %710 = vmatpush.msra.mxu0 %v687_v11  ;;  %1585 = vmatpush.msra.mxu1 %v687_v11 }
  0xa1   : > { %711 = vmatpush.msra.mxu0 %v686_v12  ;;  %1586 = vmatpush.msra.mxu1 %v686_v12 }
  0xa3   : > { %712 = vmatpush.msra.mxu0 %v685_v13  ;;  %1587 = vmatpush.msra.mxu1 %v685_v13 }
  0xa5   : > { %713 = vmatpush.msra.mxu0 %v684_v14  ;;  %1588 = vmatpush.msra.mxu1 %v684_v14 }
  0xa7   : > { %714 = vmatpush.msra.mxu0 %v683_v15  ;;  %1589 = vmatpush.msra.mxu1 %v683_v15 }
  0xa8   : > { %715 = vmatmul.f32.vlgmr.msra.gmra.mxu0 %v681_v16  ;;  %718 = vmatmul.f32.vlgmr.msra.gmra.mxu1 %v682_v17 }
 0x125   : > { %v716_v19 = vpop.f32.mrf.mxu0  ;;  %v719_v20 = vpop.f32.mrf.mxu1 }
 0x126   : > { %v1572_v21 = vpack.c.bf16 %v719_v20, %v716_v19 }
 0x128   : > { %1573 = vst [vmem:[#allocation2] sm:$0xff] %v1572_v21  }
 0x129 PF: > { %v2553_v22 = vld [vmem:[%s587_s6] sm:$0x1]  ;;  %v2228_v35 = vmov 683565275   ;;  %v2229_v37 = vmov 2475754826  }
 0x12a   : > { %v2556_v23 = vmul.f32 0.62831855, %v2553_v22  ;;  %v2230_v39 = vmov 2131351028   ;;  %v2231_v41 = vmov 2102212464  }
 0x12b   : > { %v2232_v43 = vmov 920167782   ;;  %v2233_v49 = vmov 1326507024   ;;  %s2777_s18 = sld [smem:[#allocation34_spill]]  ;;  %p1562_p1 = scmp.ne.s32.totalorder %s2335_s17, 2 }
 0x12c   : > { %v935_v24 = vand.u32 2139095040, %v2556_v23  ;;  %v932_v26 = vand.u32 2147483647, %v2556_v23  ;;  %vm934_vm12 = vcmp.lt.s32.totalorder %v2556_v23, 0  ;;  %s2778_s28 = sld [smem:[#allocation35_spill]] }
 0x12d   : > { %s2779_s15 = sld [smem:[#allocation37_spill]] (!%p1562_p1) }
 0x12e   : > { %v936_v25 = vshrl.u32 %v935_v24, 23  ;;  %v939_v29 = vand.u32 8388607, %v932_v26  ;;  %vm2600_vm13 = vcmp.le.f32.partialorder %v932_v26, 0.7853982  ;;  %s2780_s5 = sld [smem:[#allocation38_spill]] (!%p1562_p1) }
 0x130   : > { %v1543_v27 = vadd.s32 4294967169, %v936_v25  ;;  %v940_v32 = vor.u32 8388608, %v939_v29  ;;  %v2234_v25 = vmov 0  }
 0x132   : > { %v942_v28 = vadd.s32 1, %v1543_v27  ;;  %v2565_v51 = vshll.u32 %v940_v32, 8 }
 0x134   : > { %vm943_vm0 = vcmp.gt.s32.totalorder %v942_v28, 0  ;;  %v981_v63 = vand.u32 65535, %v2565_v51  ;;  %v982_v0 = vshrl.u32 %v2565_v51, 16 }
 0x135   : > { %v944_v30 = vsel %vm943_vm0, %v942_v28, 0 }
 0x136   : > { %v946_v31 = vand.u32 31, %v944_v30  ;;  %v2562_v33 = vshrl.u32 %v944_v30, 5 }
 0x138   : > { %v947_v34 = vsub.s32 32, %v946_v31  ;;  %v949_v36 = vshll.u32 %v2228_v35, %v946_v31  ;;  %v952_v38 = vshll.u32 %v2229_v37, %v946_v31  ;;  %v955_v40 = vshll.u32 %v2230_v39, %v946_v31 }
 0x139   : > { %v958_v42 = vshll.u32 %v2231_v41, %v946_v31  ;;  %v961_v44 = vshll.u32 %v2232_v43, %v946_v31  ;;  %vm964_vm1 = vcmp.lt.s32.totalorder %v2562_v33, 1  ;;  %vm967_vm2 = vcmp.lt.s32.totalorder %v2562_v33, 4 }
 0x13a   : > { %v950_v45 = vshrl.u32 %v2229_v37, %v947_v34  ;;  %v953_v46 = vshrl.u32 %v2230_v39, %v947_v34  ;;  %v956_v47 = vshrl.u32 %v2231_v41, %v947_v34  ;;  %v959_v48 = vshrl.u32 %v2232_v43, %v947_v34 }
 0x13b   : > { %v962_v50 = vshrl.u32 %v2233_v49, %v947_v34  ;;  %vm966_vm3 = vcmp.lt.s32.totalorder %v2562_v33, 3  ;;  %vm965_vm4 = vcmp.lt.s32.totalorder %v2562_v33, 2  ;;  %v948_v7 = vshrl.u32 %v2228_v35, %v947_v34 }
 0x13c   : > { %v951_v52 = vor.u32 %v950_v45, %v949_v36  ;;  %v954_v53 = vor.u32 %v953_v46, %v952_v38  ;;  %v957_v54 = vor.u32 %v956_v47, %v955_v40  ;;  %v960_v55 = vor.u32 %v959_v48, %v958_v42 }
 0x13d   : > { %v963_v56 = vor.u32 %v962_v50, %v961_v44 }
 0x13e   : > { %v972_v57 = vsel %vm964_vm1, %v951_v52, %v954_v53  ;;  %v976_v58 = vsel %vm964_vm1, %v954_v53, %v957_v54  ;;  %v973_v59 = vsel %vm967_vm2, %v960_v55, 920167782  ;;  %v968_v20 = vsel %vm964_vm1, %v948_v7, %v951_v52 }
 0x13f   : > { %v977_v60 = vsel %vm967_vm2, %v963_v56, 1326507024  ;;  %v974_v61 = vsel %vm966_vm3, %v957_v54, %v973_v59  ;;  %v969_v24 = vsel %vm967_vm2, %v957_v54, 2102212464  ;;  %vm1075_vm1 = vweird.f32 %v2556_v23 }
 0x140   : > { %v978_v62 = vsel %vm966_vm3, %v960_v55, %v977_v60  ;;  %v975_v1 = vsel %vm965_vm4, %v972_v57, %v974_v61  ;;  %v970_v36 = vsel %vm966_vm3, %v954_v53, %v969_v24  ;;  %v755_v24 = vld [vmem:[#allocation13 + $0x58] sm:$0xff]  ;;  %vm1088_vm2 = vcmp.lt.f32.partialorder %v2553_v22, 5.0  ;;  %v744_v22 = vld [vmem:[#allocation13] sm:$0xff] }
 0x141   : > { %v979_v2 = vsel %vm965_vm4, %v976_v58, %v978_v62  ;;  %v1005_v5 = vand.u32 65535, %v975_v1  ;;  %v1006_v6 = vshrl.u32 %v975_v1, 16  ;;  %v971_v44 = vsel %vm965_vm4, %v968_v20, %v970_v36 }
 0x142   : > { %v983_v3 = vand.u32 65535, %v979_v2  ;;  %v984_v4 = vshrl.u32 %v979_v2, 16  ;;  %v1025_v48 = vmul.u32 %v2565_v51, %v971_v44  ;;  %v750_v44 = vld [vmem:[#allocation13 + $0x30] sm:$0xff] }
 0x143   : > { %v1007_v11 = vmul.u32 %v1005_v5, %v981_v63  ;;  %v1008_v12 = vmul.u32 %v1006_v6, %v981_v63  ;;  %v1009_v13 = vmul.u32 %v1005_v5, %v982_v0  ;;  %v1010_v17 = vmul.u32 %v1006_v6, %v982_v0 }
 0x144   : > { %v985_v8 = vmul.u32 %v983_v3, %v981_v63  ;;  %v986_v9 = vmul.u32 %v984_v4, %v981_v63  ;;  %v987_v10 = vmul.u32 %v983_v3, %v982_v0  ;;  %v988_v14 = vmul.u32 %v984_v4, %v982_v0 }
 0x145   : > { %v1011_v18 = vshll.u32 %v1008_v12, 16  ;;  %v1013_v19 = vshll.u32 %v1009_v13, 16  ;;  %v1012_v34 = vshrl.u32 %v1008_v12, 16  ;;  %v1014_v40 = vshrl.u32 %v1009_v13, 16  ;;  %v759_v13 = vld [vmem:[#allocation13 + $0x78] sm:$0xff] }
 0x146   : > { %v989_v15 = vshll.u32 %v986_v9, 16  ;;  %v991_v16 = vshll.u32 %v987_v10, 16  ;;  %v990_v29 = vshrl.u32 %v986_v9, 16  ;;  %v992_v37 = vshrl.u32 %v987_v10, 16  ;;  %764 = vmatpush.msra.mxu0 %v759_v13  ;;  %1590 = vmatpush.msra.mxu3 %v759_v13  ;;  %v736_v13 = vld [vmem:[%s2535_s9 + $0x40] sm:$0xff] }
 0x147   : > { %vm1015_vm6 = vc.u32 %v1007_v11, %v1011_v18  ;;  %v1017_v28 = vadd.s32 %v1011_v18, %v1007_v11 }
 0x148   : > { %vm993_vm5 = vc.u32 %v985_v8, %v989_v15  ;;  %v995_v21 = vadd.s32 %v989_v15, %v985_v8  ;;  %v1016_v31 = vsel %vm1015_vm6, 1, %v2234_v25  ;;  %v741_v8 = vld [vmem:[%s2535_s9 + $0x68] sm:$0xff] }
 0x149   : > { %v994_v27 = vsel %vm993_vm5, 1, %v2234_v25  ;;  %v1018_v35 = vadd.s32 %v1016_v31, %v1010_v17  ;;  %vm1019_vm8 = vc.u32 %v1017_v28, %v1013_v19  ;;  %v1021_v43 = vadd.s32 %v1017_v28, %v1013_v19  ;;  %v756_v19 = vld [vmem:[#allocation13 + $0x60] sm:$0xff] }
 0x14a   : > { %v996_v30 = vadd.s32 %v994_v27, %v988_v14  ;;  %vm997_vm7 = vc.u32 %v995_v21, %v991_v16  ;;  %v1020_v39 = vsel %vm1019_vm8, 1, %v2234_v25  ;;  %v758_v14 = vld [vmem:[#allocation13 + $0x70] sm:$0xff]  ;;  %v757_v16 = vld [vmem:[#allocation13 + $0x68] sm:$0xff]  ;;  %vm1127_vm5 = vcmask 130048  }
 0x14b   : > { %v998_v32 = vsel %vm997_vm7, 1, %v2234_v25  ;;  %v1022_v41 = vadd.s32 %v1020_v39, %v1018_v35  ;;  %765 = vmatpush.msra.mxu0 %v758_v14  ;;  %1591 = vmatpush.msra.mxu3 %v758_v14  ;;  %v742_v14 = vld [vmem:[%s2535_s9 + $0x70] sm:$0xff] }
 0x14c   : > { %v1000_v38 = vadd.s32 %v998_v32, %v996_v30 }
 0x14d   : > { %v1023_v45 = vadd.s32 %v1022_v41, %v1012_v34  ;;  %766 = vmatpush.msra.mxu0 %v757_v16  ;;  %1592 = vmatpush.msra.mxu3 %v757_v16  ;;  %v753_v34 = vld [vmem:[#allocation13 + $0x48] sm:$0xff]  ;;  %v751_v41 = vld [vmem:[#allocation13 + $0x38] sm:$0xff]  ;;  %v855_v16 = vld [vmem:[#allocation15 + $0x50] sm:$0xff] }
 0x14e   : > { %v1001_v42 = vadd.s32 %v1000_v38, %v990_v29  ;;  %v754_v29 = vld [vmem:[#allocation13 + $0x50] sm:$0xff] }
 0x14f   : > { %v1024_v47 = vadd.s32 %v1023_v45, %v1014_v40  ;;  %767 = vmatpush.msra.mxu0 %v756_v19  ;;  %1593 = vmatpush.msra.mxu3 %v756_v19  ;;  %v1090_v40 = vlaneseq  ;;  %v743_v19 = vld [vmem:[%s2535_s9 + $0x78] sm:$0xff] }
 0x150   : > { %v1002_v46 = vadd.s32 %v1001_v42, %v992_v37  ;;  %v752_v37 = vld [vmem:[#allocation13 + $0x40] sm:$0xff] }
 0x151   : > { %v1028_v49 = vadd.s32 1, %v1024_v47  ;;  %768 = vmatpush.msra.mxu0 %v755_v24  ;;  %1594 = vmatpush.msra.mxu3 %v755_v24  ;;  %v850_v24 = vld [vmem:[#allocation15 + $0x28] sm:$0xff] }
 0x152   : > { %vm1027_vm9 = vc.u32 %v1002_v46, %v1021_v43  ;;  %v1026_v33 = vadd.s32 %v1021_v43, %v1002_v46 }
 0x153   : > { %v1029_v50 = vsel %vm1027_vm9, %v1028_v49, %v1024_v47  ;;  %769 = vmatpush.msra.mxu0 %v754_v29  ;;  %1595 = vmatpush.msra.mxu3 %v754_v29  ;;  %v2614_v47 = vshrl.u32 %v1090_v40, 7  ;;  %v848_v29 = vld [vmem:[#allocation15 + $0x18] sm:$0xff] }
 0x154   : > { %v1030_v52 = vadd.s32 %v1029_v50, %v1025_v48  ;;  %v749_v48 = vld [vmem:[#allocation13 + $0x28] sm:$0xff] }
 0x155   : > { %770 = vmatpush.msra.mxu0 %v753_v34  ;;  %1596 = vmatpush.msra.mxu3 %v753_v34 }
 0x156   : > { %v1031_v53 = vadd.s32 536870912, %v1030_v52 }
 0x157   : > { %771 = vmatpush.msra.mxu0 %v752_v37  ;;  %1597 = vmatpush.msra.mxu3 %v752_v37 }
 0x158   : > { %v1032_v54 = vshrl.u32 %v1031_v53, 30 }
 0x159   : > { %772 = vmatpush.msra.mxu0 %v751_v41  ;;  %1598 = vmatpush.msra.mxu3 %v751_v41 }
 0x15a   : > { %v1033_v55 = vshll.u32 %v1032_v54, 30  ;;  %v1056_v11 = vsub.s32 4, %v1032_v54 }
 0x15b   : > { %773 = vmatpush.msra.mxu0 %v750_v44  ;;  %1599 = vmatpush.msra.mxu3 %v750_v44 }
 0x15c   : > { %v1034_v56 = vsub.s32 %v1030_v52, %v1033_v55  ;;  %v1057_v18 = vsel %vm934_vm12, %v1056_v11, %v1032_v54  ;;  %v748_v52 = vld [vmem:[#allocation13 + $0x20] sm:$0xff]  ;;  %v2617_v55 = vadd.s32 8, %v2614_v47  ;;  %v858_v11 = vld [vmem:[#allocation15 + $0x68] sm:$0xff] }
 0x15d   : > { %v1059_v25 = vsel %vm2600_vm13, 0, %v1057_v18  ;;  %774 = vmatpush.msra.mxu0 %v749_v48  ;;  %1600 = vmatpush.msra.mxu3 %v749_v48  ;;  %v737_v18 = vld [vmem:[%s2535_s9 + $0x48] sm:$0xff] }
 0x15e   : > { %vm1035_vm10 = vcmp.lt.s32.totalorder %v1034_v56, 0  ;;  %v1036_v57 = vsub.s32 0, %v1034_v56  ;;  %v1076_v32 = vand.u32 3, %v1059_v25  ;;  %v738_v25 = vld [vmem:[%s2535_s9 + $0x50] sm:$0xff] }
 0x15f   : > { %775 = vmatpush.msra.mxu0 %v748_v52  ;;  %1601 = vmatpush.msra.mxu3 %v748_v52 }
 0x160   : > { %v1037_v58 = vsel %vm1035_vm10, %v1036_v57, %v1034_v56  ;;  %vm1081_vm14 = vcmp.eq.s32.totalorder %v1076_v32, 2  ;;  %vm1078_vm15 = vcmp.eq.s32.totalorder %v1076_v32, 0  ;;  %vm1077_vm0 = vcmp.lt.s32.totalorder %v1076_v32, 2  ;;  %v747_v57 = vld [vmem:[#allocation13 + $0x18] sm:$0xff] }
 0x161   : > { %v1038_v59 = vclz %v1037_v58  ;;  %v746_v58 = vld [vmem:[#allocation13 + $0x10] sm:$0xff]  ;;  %776 = vmatpush.msra.mxu0 %v747_v57  ;;  %1602 = vmatpush.msra.mxu3 %v747_v57 }
 0x163   : > { %v1544_v60 = vadd.s32 4294967294, %v1038_v59  ;;  %777 = vmatpush.msra.mxu0 %v746_v58  ;;  %1603 = vmatpush.msra.mxu3 %v746_v58 }
 0x165   : > { %vm1545_vm11 = vcmp.lt.s32.totalorder %v1544_v60, 0 }
 0x166   : > { %v1041_v61 = vsel %vm1545_vm11, 0, %v1544_v60  ;;  %v745_v60 = vld [vmem:[#allocation13 + $0x8] sm:$0xff] }
 0x167   : > { %v1042_v62 = vsub.s32 32, %v1041_v61  ;;  %v1043_v63 = vshll.u32 %v1034_v56, %v1041_v61  ;;  %v1046_v0 = vsub.s32 4294967266, %v1041_v61  ;;  %v1789_v56 = vld [vmem:[%s569_s23] ss:$0 sm:$0xff]  ;;  %778 = vmatpush.msra.mxu0 %v745_v60  ;;  %1604 = vmatpush.msra.mxu3 %v745_v60 }
 0x168   : > { %vm1095_vm3 = vcmp.eq.s32.totalorder %v2614_v47, %v1789_v56  ;;  %vm1096_vm4 = vcmp.eq.s32.totalorder %v2617_v55, %v1789_v56 }
 0x169   : > { %v1044_v51 = vshrl.u32 %v1026_v33, %v1042_v62  ;;  %v1047_v1 = vadd.s32 127, %v1046_v0  ;;  %779 = vmatpush.msra.mxu0 %v744_v22  ;;  %1605 = vmatpush.msra.mxu3 %v744_v22 }
 0x16b   : > { %v1045_v2 = vor.u32 %v1044_v51, %v1043_v63  ;;  %v1048_v3 = vshll.u32 %v1047_v1, 23  ;;  %v728_v63 = vld [vmem:[%s2535_s9] sm:$0xff]  ;;  %v729_v51 = vld [vmem:[%s2535_s9 + $0x8] sm:$0xff]  ;;  %v730_v1 = vld [vmem:[%s2535_s9 + $0x10] sm:$0xff] }
 0x16c   : > { %780 = vmatmul.f32.vlgmr.msra.gmra.mxu0 %v728_v63 }
 0x16d   : > { %v1049_v4 = vor.u32 4788187, %v1048_v3  ;;  %v1052_v5 = vcvt.s32.f32 %v1045_v2  ;;  %v731_v2 = vld [vmem:[%s2535_s9 + $0x18] sm:$0xff]  ;;  %v732_v3 = vld [vmem:[%s2535_s9 + $0x20] sm:$0xff] }
 0x16f   : > { %v1050_v6 = vand.u32 2147483647, %v1049_v4  ;;  %v733_v4 = vld [vmem:[%s2535_s9 + $0x28] sm:$0xff] }
 0x171   : > { %v1053_v7 = vmul.f32 %v1052_v5, %v1050_v6  ;;  %v734_v5 = vld [vmem:[%s2535_s9 + $0x30] sm:$0xff]  ;;  %v740_v6 = vld [vmem:[%s2535_s9 + $0x60] sm:$0xff] }
 0x172   : > { %816 = vmatmul.f32.vlgmr.msra.gmra.mxu3 %v740_v6 }
 0x173   : > { %v1054_v9 = vxor.u32 2147483648, %v1053_v7 }
 0x174   : > { %783 = vmatmul.f32.gmra.mxu0 %v729_v51 }
 0x175   : > { %v1055_v10 = vsel %vm934_vm12, %v1054_v9, %v1053_v7  ;;  %v735_v7 = vld [vmem:[%s2535_s9 + $0x38] sm:$0xff] }
 0x176   : > { %v1058_v12 = vsel %vm2600_vm13, %v2556_v23, %v1055_v10  ;;  %v860_v9 = vld [vmem:[#allocation15 + $0x78] sm:$0xff]  ;;  %v859_v10 = vld [vmem:[#allocation15 + $0x70] sm:$0xff] }
 0x177   : > { %v1060_v15 = vmul.f32 %v1058_v12, %v1058_v12  ;;  %865 = vmatpush.msra.mxu1 %v860_v9  ;;  %1606 = vmatpush.msrb.mxu3 %v860_v9 }
 0x179   : > { %v1061_v17 = vmul.f32 -0.001358992, %v1060_v15  ;;  %v1068_v26 = vmul.f32 -0.00019511016, %v1060_v15  ;;  %866 = vmatpush.msra.mxu1 %v859_v10  ;;  %1607 = vmatpush.msrb.mxu3 %v859_v10 }
 0x17a   : > { %819 = vmatmul.f32.gmra.mxu3 %v741_v8 }
 0x17b   : > { %v1062_v20 = vadd.f32 0.041655596, %v1061_v17  ;;  %v1069_v21 = vadd.f32 0.008332121, %v1068_v26  ;;  %867 = vmatpush.msra.mxu1 %v858_v11  ;;  %1608 = vmatpush.msrb.mxu3 %v858_v11  ;;  %v854_v17 = vld [vmem:[#allocation15 + $0x48] sm:$0xff]  ;;  %v853_v26 = vld [vmem:[#allocation15 + $0x40] sm:$0xff] }
 0x17c   : > { %786 = vmatmul.f32.gmra.mxu0 %v730_v1 }
 0x17d   : > { %v1063_v27 = vmul.f32 %v1062_v20, %v1060_v15  ;;  %v1070_v28 = vmul.f32 %v1069_v21, %v1060_v15  ;;  %v852_v20 = vld [vmem:[#allocation15 + $0x38] sm:$0xff]  ;;  %v851_v21 = vld [vmem:[#allocation15 + $0x30] sm:$0xff] }
 0x17f   : > { %v1064_v30 = vadd.f32 -0.4999988, %v1063_v27  ;;  %v1071_v31 = vadd.f32 -0.16666654, %v1070_v28  ;;  %v739_v27 = vld [vmem:[%s2535_s9 + $0x58] sm:$0xff]  ;;  %v849_v28 = vld [vmem:[#allocation15 + $0x20] sm:$0xff] }
 0x181   : > { %v1065_v35 = vmul.f32 %v1064_v30, %v1060_v15  ;;  %v1072_v36 = vmul.f32 %v1071_v31, %v1060_v15  ;;  %v856_v15 = vld [vmem:[#allocation15 + $0x58] sm:$0xff]  ;;  %v2643_v31 = vld [vmem:[%s2777_s18] ss:$0 sm:$0xff] }
 0x182   : > { %822 = vmatmul.f32.gmra.mxu3 %v742_v14  ;;  %v1568_v30 = vld [vmem:[#allocation2] sm:$0xff] }
 0x183   : > { %v1066_v38 = vadd.f32 1.0, %v1065_v35  ;;  %v1073_v39 = vadd.f32 1.0, %v1072_v36  ;;  %1159 = vmatpush.bf16.msra.mxu2 %v1568_v30  ;;  %v847_v35 = vld [vmem:[#allocation15 + $0x10] sm:$0xff]  ;;  %v846_v36 = vld [vmem:[#allocation15 + $0x8] sm:$0xff] }
 0x184   : > { %789 = vmatmul.f32.gmra.mxu0 %v731_v2 }
 0x185   : > { %v1074_v42 = vmul.f32 %v1073_v39, %v1058_v12  ;;  %v1082_v43 = vxor.u32 2147483648, %v1066_v38  ;;  %v857_v12 = vld [vmem:[#allocation15 + $0x60] sm:$0xff] }
 0x186   : > { %868 = vmatpush.msra.mxu1 %v857_v12  ;;  %1609 = vmatpush.msrb.mxu3 %v857_v12 }
 0x187   : > { %v1079_v45 = vxor.u32 2147483648, %v1074_v42  ;;  %v1083_v46 = vsel %vm1081_vm14, %v1082_v43, %v1074_v42 }
 0x188   : > { %869 = vmatpush.msra.mxu1 %v856_v15  ;;  %1610 = vmatpush.msrb.mxu3 %v856_v15 }
 0x189   : > { %v1080_v49 = vsel %vm1078_vm15, %v1066_v38, %v1079_v45  ;;  %v845_v38 = vld [vmem:[#allocation15] sm:$0xff] }
 0x18a   : > { %v1084_v50 = vsel %vm1077_vm0, %v1080_v49, %v1083_v46  ;;  %870 = vmatpush.msra.mxu1 %v855_v16  ;;  %1611 = vmatpush.msrb.mxu3 %v855_v16 }
 0x18b   : > { %v1085_v53 = vsel %vm1075_vm1, nan, %v1084_v50  ;;  %825 = vmatmul.f32.gmra.mxu3 %v743_v19 }
 0x18c   : > { %v1086_v54 = vadd.f32 1.0, %v1085_v53  ;;  %792 = vmatmul.f32.gmra.mxu0 %v732_v3  ;;  %871 = vmatpush.msra.mxu1 %v854_v17 }
 0x18d   : > { %1612 = vmatpush.msrb.mxu3 %v854_v17 }
 0x18e   : > { %v1087_v23 = vmul.f32 0.5, %v1086_v54  ;;  %872 = vmatpush.msra.mxu1 %v853_v26 }
 0x18f   : > { %1613 = vmatpush.msrb.mxu3 %v853_v26 }
 0x190   : > { %v1089_v59 = vsel %vm1088_vm2, %v1087_v23, 0.0  ;;  %873 = vmatpush.msra.mxu1 %v852_v20 }
 0x191   : > { %v1098_v33 = vperm.slane %v1089_v59, 0  ;;  %1614 = vmatpush.msrb.mxu3 %v852_v20 }
 0x192   : > { %874 = vmatpush.msra.mxu1 %v851_v21 }
 0x193   : > { %v1100_v61 = vsel %vm1095_vm3, %v1098_v33, 0.0  ;;  %v1101_v62 = vsel %vm1096_vm4, %v1098_v33, 0.0  ;;  %1615 = vmatpush.msrb.mxu3 %v851_v21 }
 0x194   : > { %v1102_v0 = vpack.c.bf16 %v1101_v62, %v1100_v61  ;;  %795 = vmatmul.f32.gmra.mxu0 %v733_v4  ;;  %875 = vmatpush.msra.mxu1 %v850_v24 }
 0x195   : > { %1616 = vmatpush.msrb.mxu3 %v850_v24 }
 0x196   : > { %1105 = vxpose.xlu0.c.b16.start.end [1/1] (short) %v1102_v0, 128  ;;  %876 = vmatpush.msra.mxu1 %v849_v28 }
 0x197   : > { %1617 = vmatpush.msrb.mxu3 %v849_v28 }
 0x198   : > { %877 = vmatpush.msra.mxu1 %v848_v29 }
 0x199   : > { %1618 = vmatpush.msrb.mxu3 %v848_v29 }
 0x19a   : > { %878 = vmatpush.msra.mxu1 %v847_v35 }
 0x19b   : > { %1619 = vmatpush.msrb.mxu3 %v847_v35 }
 0x19c   : > { %798 = vmatmul.f32.gmra.mxu0 %v734_v5  ;;  %879 = vmatpush.msra.mxu1 %v846_v36 }
 0x19d   : > { %1620 = vmatpush.msrb.mxu3 %v846_v36 }
 0x19e   : > { %880 = vmatpush.msra.mxu1 %v845_v38 }
 0x19f   : > { %1621 = vmatpush.msrb.mxu3 %v845_v38 }
 0x1a4   : > { %801 = vmatmul.f32.gmra.mxu0 %v735_v7 }
 0x1ac   : > { %804 = vmatmul.f32.gmra.mxu0 %v736_v13 }
 0x1b4   : > { %807 = vmatmul.f32.gmra.mxu0 %v737_v18 }
 0x1bc   : > { %810 = vmatmul.f32.gmra.mxu0 %v738_v25 }
 0x1c4   : > { %813 = vmatmul.f32.gmra.mxu0 %v739_v27 }
 0x1e9   : > { %v781_v32 = vpop.f32.mrf.mxu0 }
 0x1ea   : > { %v782_v34 = vadd.f32 %v2643_v31, %v781_v32  ;;  %v2672_v32 = vld [vmem:[%s2778_s28] ss:$0 sm:$0xff] }
 0x1ec   : > { %1793 = vtanh.f32 %v782_v34 }
 0x1f1   : > { %v784_v37 = vpop.f32.mrf.mxu0 }
 0x1f2   : > { %v1794_v39 = vpop.eup %1793  ;;  %v785_v40 = vadd.f32 %v2643_v31, %v784_v37 }
 0x1f3   : > { %881 = vmatmul.f32.vlgmr.msra.gmra.mxu1 %v1794_v39 }
 0x1f4   : > { %1795 = vtanh.f32 %v785_v40 }
 0x1f5   : > { %v817_v8 = vpop.f32.mrf.mxu3 }
 0x1f6   : > { %v818_v11 = vadd.f32 %v2643_v31, %v817_v8 }
 0x1f9   : > { %v787_v41 = vpop.f32.mrf.mxu0 }
 0x1fa   : > { %v1796_v42 = vpop.eup %1795  ;;  %v788_v43 = vadd.f32 %v2643_v31, %v787_v41 }
 0x1fb   : > { %884 = vmatmul.f32.gmra.mxu1 %v1796_v42 }
 0x1fc   : > { %1797 = vtanh.f32 %v788_v43 }
 0x1fd   : > { %v820_v12 = vpop.f32.mrf.mxu3 }
 0x1fe   : > { %v821_v14 = vadd.f32 %v2643_v31, %v820_v12 }
 0x201   : > { %v790_v44 = vpop.f32.mrf.mxu0 }
 0x202   : > { %v1798_v45 = vpop.eup %1797  ;;  %v791_v46 = vadd.f32 %v2643_v31, %v790_v44 }
 0x203   : > { %887 = vmatmul.f32.gmra.mxu1 %v1798_v45 }
 0x204   : > { %1799 = vtanh.f32 %v791_v46 }
 0x205   : > { %v823_v17 = vpop.f32.mrf.mxu3 }
 0x206   : > { %v824_v18 = vadd.f32 %v2643_v31, %v823_v17 }
 0x209   : > { %v793_v48 = vpop.f32.mrf.mxu0 }
 0x20a   : > { %v1800_v49 = vpop.eup %1799  ;;  %v794_v50 = vadd.f32 %v2643_v31, %v793_v48 }
 0x20b   : > { %890 = vmatmul.f32.gmra.mxu1 %v1800_v49 }
 0x20c   : > { %1801 = vtanh.f32 %v794_v50 }
 0x20e   : > { %v826_v19 = vpop.f32.mrf.mxu3 }
 0x20f   : > { %v827_v21 = vadd.f32 %v2643_v31, %v826_v19 }
 0x211   : > { %v796_v53 = vpop.f32.mrf.mxu0 }
 0x212   : > { %v1802_v54 = vpop.eup %1801  ;;  %v797_v56 = vadd.f32 %v2643_v31, %v796_v53 }
 0x213   : > { %893 = vmatmul.f32.gmra.mxu1 %v1802_v54 }
 0x214   : > { %1803 = vtanh.f32 %v797_v56 }
 0x219   : > { %v799_v57 = vpop.f32.mrf.mxu0 }
 0x21a   : > { %v1804_v23 = vpop.eup %1803  ;;  %v800_v58 = vadd.f32 %v2643_v31, %v799_v57 }
 0x21b   : > { %896 = vmatmul.f32.gmra.mxu1 %v1804_v23 }
 0x21c   : > { %1805 = vtanh.f32 %v800_v58 }
 0x221   : > { %v802_v60 = vpop.f32.mrf.mxu0 }
 0x222   : > { %v1806_v33 = vpop.eup %1805  ;;  %v803_v22 = vadd.f32 %v2643_v31, %v802_v60 }
 0x223   : > { %899 = vmatmul.f32.gmra.mxu1 %v1806_v33 }
 0x224   : > { %1807 = vtanh.f32 %v803_v22 }
 0x229   : > { %v805_v61 = vpop.f32.mrf.mxu0 }
 0x22a   : > { %v1808_v62 = vpop.eup %1807  ;;  %v806_v63 = vadd.f32 %v2643_v31, %v805_v61 }
 0x22b   : > { %902 = vmatmul.f32.gmra.mxu1 %v1808_v62 }
 0x22c   : > { %1809 = vtanh.f32 %v806_v63 }
 0x231   : > { %v808_v51 = vpop.f32.mrf.mxu0 }
 0x232   : > { %v1810_v1 = vpop.eup %1809  ;;  %v809_v2 = vadd.f32 %v2643_v31, %v808_v51 }
 0x233   : > { %905 = vmatmul.f32.gmra.mxu1 %v1810_v1 }
 0x234   : > { %1811 = vtanh.f32 %v809_v2 }
 0x239   : > { %v811_v3 = vpop.f32.mrf.mxu0 }
 0x23a   : > { %v1812_v4 = vpop.eup %1811  ;;  %v812_v5 = vadd.f32 %v2643_v31, %v811_v3 }
 0x23b   : > { %908 = vmatmul.f32.gmra.mxu1 %v1812_v4 }
 0x23c   : > { %1813 = vtanh.f32 %v812_v5 }
 0x241   : > { %v814_v7 = vpop.f32.mrf.mxu0 }
 0x242   : > { %v1113_v52 = vpop.trf.xlu0  ;;  %v1814_v9 = vpop.eup %1813  ;;  %v815_v10 = vadd.f32 %v2643_v31, %v814_v7 }
 0x243   : > { %1550 = vmatmul.msk.bf16.vlgmr.msra.gmra.mxu2 %vm1127_vm5, %v1113_v52  ;;  %911 = vmatmul.f32.gmra.mxu1 %v1814_v9 }
 0x244   : > { %1815 = vtanh.f32 %v815_v10 }
 0x245   : > { %1817 = vtanh.f32 %v818_v11 }
 0x246   : > { %1819 = vtanh.f32 %v821_v14 }
 0x247   : > { %1821 = vtanh.f32 %v824_v18 }
 0x248   : > { %1823 = vtanh.f32 %v827_v21 }
 0x24a   : > { %v1816_v13 = vpop.eup %1815 }
 0x24b   : > { %v1818_v15 = vpop.eup %1817  ;;  %914 = vmatmul.f32.gmra.mxu1 %v1816_v13 }
 0x24c   : > { %917 = vmatmul.f32.vlgmr.msrb.gmra.mxu3 %v1818_v15  ;;  %v1820_v26 = vpop.eup %1819 }
 0x24d   : > { %v1822_v20 = vpop.eup %1821 }
 0x24e   : > { %v1824_v25 = vpop.eup %1823 }
 0x252   : > { %v1114_v59 = vpop.trf.xlu0 }
 0x253   : > { %1551 = vmatmul.msk.bf16.gmra.mxu2 %vm1127_vm5, %v1114_v59 }
 0x254   : > { %920 = vmatmul.f32.gmra.mxu3 %v1820_v26 }
 0x25c   : > { %923 = vmatmul.f32.gmra.mxu3 %v1822_v20 }
 0x262   : > { %v1115_v0 = vpop.trf.xlu0 }
 0x263   : > { %1552 = vmatmul.msk.bf16.gmra.mxu2 %vm1127_vm5, %v1115_v0 }
 0x264   : > { %926 = vmatmul.f32.gmra.mxu3 %v1824_v25 }
 0x270   : > { %v882_v29 = vpop.f32.mrf.mxu1 }
 0x271   : > { %v883_v31 = vadd.f32 %v2672_v32, %v882_v29 }
 0x272   : > { %v1116_v6 = vpop.trf.xlu0 }
 0x273   : > { %1553 = vmatmul.msk.bf16.gmra.mxu2 %vm1127_vm5, %v1116_v6 }
 0x278   : > { %v885_v30 = vpop.f32.mrf.mxu1 }
 0x279   : > { %v886_v37 = vadd.f32 %v2672_v32, %v885_v30 }
 0x280   : > { %v888_v35 = vpop.f32.mrf.mxu1 }
 0x281   : > { %v889_v42 = vadd.f32 %v2672_v32, %v888_v35 }
 0x282   : > { %v1117_v16 = vpop.trf.xlu0 }
 0x283   : > { %1554 = vmatmul.msk.bf16.gmra.mxu2 %vm1127_vm5, %v1117_v16 }
 0x288   : > { %v891_v40 = vpop.f32.mrf.mxu1 }
 0x289   : > { %v892_v46 = vadd.f32 %v2672_v32, %v891_v40 }
 0x290   : > { %v894_v45 = vpop.f32.mrf.mxu1 }
 0x291   : > { %v895_v52 = vadd.f32 %v2672_v32, %v894_v45  ;;  %v1790_v45 = vld [vmem:[%s578_s1] ss:$0 sm:$0xff] }
 0x292   : > { %v1118_v24 = vpop.trf.xlu0  ;;  %vm1228_vm6 = vcmp.eq.s32.totalorder %v2617_v55, %v1790_v45  ;;  %vm1227_vm7 = vcmp.eq.s32.totalorder %v2614_v47, %v1790_v45 }
 0x293   : > { %1555 = vmatmul.msk.bf16.gmra.mxu2 %vm1127_vm5, %v1118_v24  ;;  %vm1560_vm8 = vmpackc.low %vm1228_vm6, %vm1227_vm7 }
 0x298   : > { %v897_v53 = vpop.f32.mrf.mxu1 }
 0x299   : > { %v898_v57 = vadd.f32 %v2672_v32, %v897_v53 }
 0x2a0   : > { %v900_v58 = vpop.f32.mrf.mxu1 }
 0x2a1   : > { %v901_v61 = vadd.f32 %v2672_v32, %v900_v58 }
 0x2a2   : > { %v1119_v27 = vpop.trf.xlu0 }
 0x2a3   : > { %1556 = vmatmul.msk.bf16.gmra.mxu2 %vm1127_vm5, %v1119_v27 }
 0x2a8   : > { %v903_v22 = vpop.f32.mrf.mxu1 }
 0x2a9   : > { %v904_v62 = vadd.f32 %v2672_v32, %v903_v22 }
 0x2b0   : > { %v906_v7 = vpop.f32.mrf.mxu1 }
 0x2b2   : > { %v1120_v28 = vpop.trf.xlu0 }
 0x2b3   : > { %1557 = vmatmul.msk.bf16.gmra.mxu2 %vm1127_vm5, %v1120_v28 }
 0x2b8   : > { %v909_v10 = vpop.f32.mrf.mxu1 }
 0x2c0   : > { %v912_v13 = vpop.f32.mrf.mxu1 }
 0x2c1   : > { %v913_v29 = vadd.f32 %v2672_v32, %v912_v13 }
 0x2c6   : > { %v1161_v34 = vpop.f32.mrf.mxu2 }
 0x2c7   : > { %v2675_v36 = vmul.f32 %v1161_v34, %v883_v31  ;;  %v910_v31 = vadd.f32 %v2672_v32, %v909_v10 }
 0x2c8   : > { %v915_v18 = vpop.f32.mrf.mxu1 }
 0x2c9   : > { %v916_v25 = vadd.f32 %v2672_v32, %v915_v18 }
 0x2ce   : > { %v1163_v38 = vpop.f32.mrf.mxu2 }
 0x2cf   : > { %v2678_v39 = vmul.f32 %v1163_v38, %v886_v37  ;;  %v918_v5 = vpop.f32.mrf.mxu3  ;;  %v907_v37 = vadd.f32 %v2672_v32, %v906_v7 }
 0x2d0   : > { %v919_v20 = vadd.f32 %v2672_v32, %v918_v5 }
 0x2d1   : > { %v1217_v41 = vpack.c.bf16 %v2678_v39, %v2675_v36 }
 0x2d6   : > { %v1166_v43 = vpop.f32.mrf.mxu2 }
 0x2d7   : > { %v2683_v44 = vmul.f32 %v1166_v43, %v889_v42  ;;  %v921_v8 = vpop.f32.mrf.mxu3 }
 0x2d8   : > { %v922_v26 = vadd.f32 %v2672_v32, %v921_v8 }
 0x2de   : > { %v1168_v48 = vpop.f32.mrf.mxu2 }
 0x2df   : > { %v1204_v49 = vmul.f32 %v1168_v48, %v892_v46  ;;  %v924_v12 = vpop.f32.mrf.mxu3  ;;  %v1234_v46 = vld [vmem:[#allocation3] sm:$0xff] }
 0x2e0   : > { %v925_v16 = vadd.f32 %v2672_v32, %v924_v12 }
 0x2e1   : > { %v1218_v50 = vpack.c.bf16 %v1204_v49, %v2683_v44 }
 0x2e6   : > { %v1171_v54 = vpop.f32.mrf.mxu2 }
 0x2e7   : > { %v1205_v56 = vmul.f32 %v1171_v54, %v895_v52  ;;  %v927_v15 = vpop.f32.mrf.mxu3  ;;  %v1235_v52 = vld [vmem:[#allocation3 + $0x8] sm:$0xff] }
 0x2e8   : > { %v928_v17 = vadd.f32 %v2672_v32, %v927_v15  ;;  %v2235_v32 = vmov 1.0|1.0  }
 0x2ee   : > { %v1173_v23 = vpop.f32.mrf.mxu2 }
 0x2ef   : > { %v1206_v59 = vmul.f32 %v1173_v23, %v898_v57 }
 0x2f1   : > { %v1219_v60 = vpack.c.bf16 %v1206_v59, %v1205_v56 }
 0x2f6   : > { %v1176_v33 = vpop.f32.mrf.mxu2 }
 0x2f7   : > { %v1207_v0 = vmul.f32 %v1176_v33, %v901_v61 }
 0x2fe   : > { %v1178_v63 = vpop.f32.mrf.mxu2 }
 0x2ff   : > { %v1208_v51 = vmul.f32 %v1178_v63, %v904_v62 }
 0x301   : > { %v1220_v1 = vpack.c.bf16 %v1208_v51, %v1207_v0 }
 0x306   : > { %v1181_v2 = vpop.f32.mrf.mxu2 }
 0x307   : > { %v1209_v43 = vmul.f32 %v1181_v2, %v907_v37 }
 0x30e   : > { %v1183_v3 = vpop.f32.mrf.mxu2 }
 0x30f   : > { %v1210_v40 = vmul.f32 %v1183_v3, %v910_v31 }
 0x311   : > { %v1221_v44 = vpack.c.bf16 %v1210_v40, %v1209_v43 }
 0x316   : > { %v1186_v4 = vpop.f32.mrf.mxu2 }
 0x317   : > { %v1211_v38 = vmul.f32 %v1186_v4, %v913_v29 }
 0x31e   : > { %v1188_v6 = vpop.f32.mrf.mxu2 }
 0x31f   : > { %v1212_v34 = vmul.f32 %v1188_v6, %v916_v25 }
 0x321   : > { %v1222_v42 = vpack.c.bf16 %v1212_v34, %v1211_v38 }
 0x326   : > { %v1191_v9 = vpop.f32.mrf.mxu2 }
 0x327   : > { %v1213_v30 = vmul.f32 %v1191_v9, %v919_v20 }
 0x32e   : > { %v1193_v11 = vpop.f32.mrf.mxu2 }
 0x32f   : > { %v1214_v27 = vmul.f32 %v1193_v11, %v922_v26 }
 0x331   : > { %v1223_v35 = vpack.c.bf16 %v1214_v27, %v1213_v30 }
 0x336   : > { %v1196_v14 = vpop.f32.mrf.mxu2 }
 0x337   : > { %v1215_v21 = vmul.f32 %v1196_v14, %v925_v16 }
 0x33e   : > { %v1198_v19 = vpop.f32.mrf.mxu2 }
 0x33f   : > { %v1216_v24 = vmul.f32 %v1198_v19, %v928_v17 }
 0x341   : > { %v1224_v28 = vpack.c.bf16 %v1216_v24, %v1215_v21 }
 0x343   : > { %1236 = vmatpush.bf16.msra.mxu3 %v1224_v28 }
 0x347   : > { %1237 = vmatpush.bf16.msra.mxu3 %v1223_v35 }
 0x34b   : > { %1238 = vmatpush.bf16.msra.mxu3 %v1222_v42 }
 0x34f   : > { %1239 = vmatpush.bf16.msra.mxu3 %v1221_v44 }
 0x353   : > { %1240 = vmatpush.bf16.msra.mxu3 %v1220_v1 }
 0x357   : > { %1241 = vmatpush.bf16.msra.mxu3 %v1219_v60 }
 0x35b   : > { %1242 = vmatpush.bf16.msra.mxu3 %v1218_v50 }
 0x35f   : > { %1243 = vmatpush.bf16.msra.mxu3 %v1217_v41 }
 0x362   : > { %1561 = vmatmul.msk.bf16.vlgmr.msra.gmra.mxu3 %vm1560_vm8, %v2235_v32 }
 0x3e5   : > { %v1245_v48 = vpop.f32.mrf.mxu3 }
 0x3e6   : > { %v1250_v49 = vadd.f32 %v1245_v48, %v1234_v46 }
 0x3e8   : > { %1252 = vst [vmem:[#allocation3] sm:$0xff] %v1250_v49 }
 0x3ec   : > { %1257 = sbr.rel (%p1562_p1) target bundleno = 1317 (0x525), region = 124 }
 0x3ed   : > { %v1247_v53 = vpop.f32.mrf.mxu3 }
 0x3ee   : > { %v1251_v54 = vadd.f32 %v1247_v53, %v1235_v52 }
 0x3f0   : > { %1253 = vst [vmem:[#allocation3 + $0x8] sm:$0xff] %v1251_v54 }
 0x3f1   : > { %v1275_v55 = vld [vmem:[#allocation18 + $0x78] sm:$0xff]  ;;  %v1274_v47 = vld [vmem:[#allocation18 + $0x70] sm:$0xff]  ;;  %v1273_v36 = vld [vmem:[#allocation18 + $0x68] sm:$0xff] }
 0x3f2   : > { %1622 = vmatpush.msra.mxu2 %v1275_v55  ;;  %1280 = vmatpush.msra.mxu0 %v1275_v55  ;;  %v1272_v39 = vld [vmem:[#allocation18 + $0x60] sm:$0xff]  ;;  %v1271_v41 = vld [vmem:[#allocation18 + $0x58] sm:$0xff]  ;;  %v1319_v56 = vld [vmem:[#allocation19 + $0x70] sm:$0xff] }
 0x3f3   : > { %v1320_v50 = vld [vmem:[#allocation19 + $0x78] sm:$0xff]  ;;  %v1270_v57 = vld [vmem:[#allocation18 + $0x50] sm:$0xff]  ;;  %v1318_v23 = vld [vmem:[#allocation19 + $0x68] sm:$0xff] }
 0x3f4   : > { %1623 = vmatpush.msra.mxu2 %v1274_v47  ;;  %1281 = vmatpush.msra.mxu0 %v1274_v47  ;;  %v1269_v58 = vld [vmem:[#allocation18 + $0x48] sm:$0xff]  ;;  %v1317_v59 = vld [vmem:[#allocation19 + $0x60] sm:$0xff]  ;;  %v1316_v33 = vld [vmem:[#allocation19 + $0x58] sm:$0xff] }
 0x3f5   : > { %1638 = vmatpush.msra.mxu3 %v1320_v50  ;;  %1325 = vmatpush.msra.mxu1 %v1320_v50  ;;  %v1268_v60 = vld [vmem:[#allocation18 + $0x40] sm:$0xff]  ;;  %v1267_v22 = vld [vmem:[#allocation18 + $0x38] sm:$0xff]  ;;  %v1315_v61 = vld [vmem:[#allocation19 + $0x50] sm:$0xff] }
 0x3f6   : > { %1624 = vmatpush.msra.mxu2 %v1273_v36  ;;  %1282 = vmatpush.msra.mxu0 %v1273_v36  ;;  %v1266_v62 = vld [vmem:[#allocation18 + $0x30] sm:$0xff]  ;;  %v1314_v63 = vld [vmem:[#allocation19 + $0x48] sm:$0xff]  ;;  %v1313_v51 = vld [vmem:[#allocation19 + $0x40] sm:$0xff] }
 0x3f7   : > { %1639 = vmatpush.msra.mxu3 %v1319_v56  ;;  %1326 = vmatpush.msra.mxu1 %v1319_v56  ;;  %v1265_v0 = vld [vmem:[#allocation18 + $0x28] sm:$0xff]  ;;  %v1264_v1 = vld [vmem:[#allocation18 + $0x20] sm:$0xff]  ;;  %v1312_v2 = vld [vmem:[#allocation19 + $0x38] sm:$0xff] }
 0x3f8   : > { %1625 = vmatpush.msra.mxu2 %v1272_v39  ;;  %1283 = vmatpush.msra.mxu0 %v1272_v39  ;;  %v1263_v3 = vld [vmem:[#allocation18 + $0x18] sm:$0xff]  ;;  %v1311_v4 = vld [vmem:[#allocation19 + $0x30] sm:$0xff]  ;;  %v1310_v6 = vld [vmem:[#allocation19 + $0x28] sm:$0xff] }
 0x3f9   : > { %1640 = vmatpush.msra.mxu3 %v1318_v23  ;;  %1327 = vmatpush.msra.mxu1 %v1318_v23  ;;  %v1262_v5 = vld [vmem:[#allocation18 + $0x10] sm:$0xff]  ;;  %v1261_v7 = vld [vmem:[#allocation18 + $0x8] sm:$0xff]  ;;  %v1260_v8 = vld [vmem:[#allocation18] sm:$0xff] }
 0x3fa   : > { %1626 = vmatpush.msra.mxu2 %v1271_v41  ;;  %1284 = vmatpush.msra.mxu0 %v1271_v41  ;;  %v1259_v9 = vld [vmem:[#allocation3 + $0x8] sm:$0xff]  ;;  %v1258_v10 = vld [vmem:[#allocation3] sm:$0xff]  ;;  %v1307_v13 = vld [vmem:[#allocation19 + $0x10] sm:$0xff] }
 0x3fb   : > { %1641 = vmatpush.msra.mxu3 %v1317_v59  ;;  %1328 = vmatpush.msra.mxu1 %v1317_v59  ;;  %v1309_v11 = vld [vmem:[#allocation19 + $0x20] sm:$0xff]  ;;  %v1308_v12 = vld [vmem:[#allocation19 + $0x18] sm:$0xff]  ;;  %v1306_v14 = vld [vmem:[#allocation19 + $0x8] sm:$0xff] }
 0x3fc   : > { %1627 = vmatpush.msra.mxu2 %v1270_v57  ;;  %1285 = vmatpush.msra.mxu0 %v1270_v57  ;;  %v1305_v15 = vld [vmem:[#allocation19] sm:$0xff]  ;;  %v1825_v16 = vld [vmem:[%s2779_s15] ss:$0 sm:$0xff] }
 0x3fd   : > { %1642 = vmatpush.msra.mxu3 %v1316_v33  ;;  %1329 = vmatpush.msra.mxu1 %v1316_v33  ;;  %v1826_v24 = vld [vmem:[%s2780_s5] ss:$0 sm:$0xff] }
 0x3fe   : > { %1628 = vmatpush.msra.mxu2 %v1269_v58  ;;  %1286 = vmatpush.msra.mxu0 %v1269_v58 }
 0x3ff   : > { %1643 = vmatpush.msra.mxu3 %v1315_v61  ;;  %1330 = vmatpush.msra.mxu1 %v1315_v61 }
 0x400   : > { %1629 = vmatpush.msra.mxu2 %v1268_v60  ;;  %1287 = vmatpush.msra.mxu0 %v1268_v60 }
 0x401   : > { %1644 = vmatpush.msra.mxu3 %v1314_v63  ;;  %1331 = vmatpush.msra.mxu1 %v1314_v63 }
 0x402   : > { %1630 = vmatpush.msra.mxu2 %v1267_v22  ;;  %1288 = vmatpush.msra.mxu0 %v1267_v22 }
 0x403   : > { %1645 = vmatpush.msra.mxu3 %v1313_v51  ;;  %1332 = vmatpush.msra.mxu1 %v1313_v51 }
 0x404   : > { %1631 = vmatpush.msra.mxu2 %v1266_v62  ;;  %1289 = vmatpush.msra.mxu0 %v1266_v62 }
 0x405   : > { %1646 = vmatpush.msra.mxu3 %v1312_v2  ;;  %1333 = vmatpush.msra.mxu1 %v1312_v2 }
 0x406   : > { %1632 = vmatpush.msra.mxu2 %v1265_v0  ;;  %1290 = vmatpush.msra.mxu0 %v1265_v0 }
 0x407   : > { %1647 = vmatpush.msra.mxu3 %v1311_v4  ;;  %1334 = vmatpush.msra.mxu1 %v1311_v4 }
 0x408   : > { %1633 = vmatpush.msra.mxu2 %v1264_v1  ;;  %1291 = vmatpush.msra.mxu0 %v1264_v1 }
 0x409   : > { %1648 = vmatpush.msra.mxu3 %v1310_v6  ;;  %1335 = vmatpush.msra.mxu1 %v1310_v6 }
 0x40a   : > { %1634 = vmatpush.msra.mxu2 %v1263_v3  ;;  %1292 = vmatpush.msra.mxu0 %v1263_v3 }
 0x40b   : > { %1649 = vmatpush.msra.mxu3 %v1309_v11  ;;  %1336 = vmatpush.msra.mxu1 %v1309_v11 }
 0x40c   : > { %1635 = vmatpush.msra.mxu2 %v1262_v5  ;;  %1293 = vmatpush.msra.mxu0 %v1262_v5 }
 0x40d   : > { %1650 = vmatpush.msra.mxu3 %v1308_v12  ;;  %1337 = vmatpush.msra.mxu1 %v1308_v12 }
 0x40e   : > { %1636 = vmatpush.msra.mxu2 %v1261_v7  ;;  %1294 = vmatpush.msra.mxu0 %v1261_v7 }
 0x40f   : > { %1651 = vmatpush.msra.mxu3 %v1307_v13  ;;  %1338 = vmatpush.msra.mxu1 %v1307_v13 }
 0x410   : > { %1637 = vmatpush.msra.mxu2 %v1260_v8  ;;  %1295 = vmatpush.msra.mxu0 %v1260_v8 }
 0x411   : > { %1299 = vmatmul.f32.vlgmr.msra.gmra.mxu2 %v1259_v9  ;;  %1296 = vmatmul.f32.vlgmr.msra.gmra.mxu0 %v1258_v10 }
 0x412   : > { %1652 = vmatpush.msra.mxu3 %v1306_v14  ;;  %1339 = vmatpush.msra.mxu1 %v1306_v14 }
 0x414   : > { %1653 = vmatpush.msra.mxu3 %v1305_v15  ;;  %1340 = vmatpush.msra.mxu1 %v1305_v15 }
 0x48e   : > { %v1297_v17 = vpop.f32.mrf.mxu0 }
 0x48f   : > { %v1298_v26 = vadd.f32 %v1825_v16, %v1297_v17 }
 0x491   : > { %1827 = vtanh.f32 %v1298_v26 }
 0x494   : > { %v1300_v18 = vpop.f32.mrf.mxu2 }
 0x495   : > { %v1301_v19 = vadd.f32 %v1825_v16, %v1300_v18 }
 0x497   : > { %v1828_v20 = vpop.eup %1827  ;;  %1829 = vtanh.f32 %v1301_v19 }
 0x498   : > { %1341 = vmatmul.f32.vlgmr.msra.gmra.mxu1 %v1828_v20 }
 0x49d   : > { %v1830_v21 = vpop.eup %1829 }
 0x49e   : > { %1344 = vmatmul.f32.vlgmr.msra.gmra.mxu3 %v1830_v21 }
 0x515   : > { %v1342_v25 = vpop.f32.mrf.mxu1 }
 0x516   : > { %v1343_v27 = vadd.f32 %v1826_v24, %v1342_v25 }
 0x518   : > { %1348 = vst [vmem:[#allocation21] sm:$0xff] %v1343_v27 }
 0x521   : > { %v1345_v28 = vpop.f32.mrf.mxu3 }
 0x522   : > { %v1346_v29 = vadd.f32 %v1826_v24, %v1345_v28 }
 0x524   : > { %1349 = vst [vmem:[#allocation21 + $0x8] sm:$0xff] %v1346_v29 }
 0x525 PF: > { %p1735_p3 = scmp.eq.s32.totalorder %s2335_s17, 2  ;;  %s2236_s24 = smov [#allocation21]  }
 0x526   : > { %s1355_s13 = sshll.u32 %s2236_s24, 4  ;;  %s2781_s23 = sld [smem:[#allocation39_spill]]  ;;  %s1356_s13 = int_to_ptr.vmem [resolvable:$true] %s1355_s13 }
 0x527   : > { %s2237_s21 = smov 128   ;;  %s2238_s6 = smov 8  }
 0x52c   : > { %s1357_s1 = sshll.u32 %s2781_s23, 4  ;;  %s1358_s1 = int_to_ptr.hbm [resolvable:$true] %s1357_s1 }
 0x52d   : > { %1687 = dma.vmem_to_hbm [thread:$0]  (%p1735_p3), %s1356_s13, 256, %s1358_s1, [#allocation6], %s2237_s21, %s2237_s21, %s2238_s6  }
 0x52e   : > { %2200 = dma.done.wait (%p1735_p3), [#allocation6], 256  }
 0x52f   : > { %2202 = vsyncadd (%p1735_p3), [#allocation6], 4294967040 }
 0x530 PF: > { %s2782_s16 = sld [smem:[#allocation30_spill]]  ;;  %s2785_s29 = smov %s2209_s30 }
 0x531   : > { %s2783_s8 = sld [smem:[#allocation29_spill]] }
 0x532   : > { %s2784_s15 = sld [smem:[#allocation31_spill]] }
 0x536   : > { %p32_p4 = scmp.ge.s32.totalorder %s2782_s16, 5  }
 0x537   : > { %s2786_s30 = smov %s2783_s8 }
 0x538   :  { %34 = sbr.rel (!%p32_p4) target bundleno = 19 (0x13), region = 181 }
 0x53d   :  { %1374 = vsyncpa [#allocation5], 1 }
 0x53e   :  { %1376 = vsyncpa [#allocation5 + $0x1], 1 }
 0x53f   :  { %1377 = vsyncpa [#allocation8], 1 }
 0x540   :  { %1379 = vsyncpa [#allocation8 + $0x1], 1 }
 0x541   :  { %1380 = vsyncpa [#allocation11], 1 }
 0x542   :  { %1382 = vsyncpa [#allocation11 + $0x1], 1 }
 0x543   :  { %1383 = vsyncpa [#allocation14], 1 }
 0x544   :  { %1384 = vsyncpa [#allocation17], 1 }
 0x545   :  { %1385 = vsyncpa [#allocation20], 1 }
 0x546   :  { %1386 = vsyncpa [#allocation6], 1 }
 0x547   :  { %1388 = vsyncpa [#allocation6 + $0x1], 1 }

</bundles_post_ra>
